<compile_context>
chip_gen: v6e
topology: v6e:2x2x1
jax: 0.10.0
libtpu: 0.0.40
codegen_flags: <defaults>
</compile_context>

<pallas_src>
import functools

import jax
import jax.numpy as jnp
from jax.experimental import pallas as pl
from jax.experimental.pallas import tpu as pltpu

NEG_SLOPE = 0.2
EPS = 1e-5
ACT_DTYPE = jnp.bfloat16        # inter-layer activation / MXU input dtype


def _compiler_params(n_grid_dims):
    return pltpu.CompilerParams(
        dimension_semantics=("parallel",) * n_grid_dims,
        vmem_limit_bytes=32 * 1024 * 1024,
    )


# ----------------------------- Pallas kernels ------------------------------

def _conv_bias_lrelu_kernel(p_ref, w_ref, b_ref, o_ref):
    """Per-sample conv tile: (Cout, K) @ (K, TH) + bias, LeakyReLU(0.2)."""
    acc = jnp.dot(w_ref[...], p_ref[0], preferred_element_type=jnp.float32)
    acc = acc + b_ref[...]                              # (Cout, 1) broadcast
    acc = jnp.where(acc >= 0, acc, NEG_SLOPE * acc)
    o_ref[0] = acc.astype(o_ref.dtype)


def _conv_in_lrelu_kernel(p_ref, w_ref, g_ref, be_ref, o_ref):
    """Per-sample fused: conv (no bias) -> InstanceNorm(affine) -> LeakyReLU.

    p_ref: (1, K, HW) bf16, w_ref: (Cout, K) bf16.  Stats over the lane (HW) axis.
    """
    acc = jnp.dot(w_ref[...], p_ref[0], preferred_element_type=jnp.float32)
    mean = jnp.mean(acc, axis=1, keepdims=True)
    var = jnp.mean(jnp.square(acc - mean), axis=1, keepdims=True)
    y = (acc - mean) * jax.lax.rsqrt(var + EPS)
    y = y * g_ref[...] + be_ref[...]
    y = jnp.where(y >= 0, y, NEG_SLOPE * y)
    o_ref[0] = y.astype(o_ref.dtype)


def _conv_in_lrelu_final_kernel(p_ref, w_ref, g_ref, be_ref, wmap_ref, b5_ref, o_ref):
    """Block-4 fused with the final 3x3 / Cout=1 conv.

    conv4 -> InstanceNorm(affine) -> LeakyReLU -> (VPU multiply-reduce against
    precomputed per-output-position tap maps) + bias5.
    """
    acc = jnp.dot(w_ref[...], p_ref[0], preferred_element_type=jnp.float32)
    mean = jnp.mean(acc, axis=1, keepdims=True)
    var = jnp.mean(jnp.square(acc - mean), axis=1, keepdims=True)
    y = (acc - mean) * jax.lax.rsqrt(var + EPS)
    y = y * g_ref[...] + be_ref[...]
    y = jnp.where(y >= 0, y, NEG_SLOPE * y)            # (Cout, HW) f32

    n_out = wmap_ref.shape[0]                          # (= final 2x2 -> 4 positions)
    col = jax.lax.broadcasted_iota(jnp.int32, (1, n_out), 1)
    out = jnp.zeros((1, n_out), jnp.float32)
    for p in range(n_out):
        zp = jnp.sum(y * wmap_ref[p])                  # full 2-D reduce -> scalar
        out = out + zp * (col == p).astype(jnp.float32)
    o_ref[0] = (out + b5_ref[...]).astype(o_ref.dtype)


# ------------------------------ Pallas wrappers ----------------------------

def conv1_pallas(patches_t, w_flat, bias):
    """patches_t: (N, K, HW) bf16; w_flat: (Cout, K) bf16; bias: (Cout, 1) f32."""
    n, k, hw = patches_t.shape
    cout = w_flat.shape[0]
    th = 512 if (hw % 512 == 0 and hw >= 512) else hw   # lane tile (multiple of 128)
    grid = (n, hw // th)
    return pl.pallas_call(
        _conv_bias_lrelu_kernel,
        out_shape=jax.ShapeDtypeStruct((n, cout, hw), ACT_DTYPE),
        grid=grid,
        in_specs=[
            pl.BlockSpec((1, k, th), lambda i, t: (i, 0, t)),
            pl.BlockSpec((cout, k), lambda i, t: (0, 0)),
            pl.BlockSpec((cout, 1), lambda i, t: (0, 0)),
        ],
        out_specs=pl.BlockSpec((1, cout, th), lambda i, t: (i, 0, t)),
        compiler_params=_compiler_params(2),
    )(patches_t, w_flat, bias)


def disc_block_pallas(patches_t, w_flat, gamma, beta):
    """Fused Conv(no bias)+InstanceNorm+LeakyReLU; grid over batch."""
    n, k, hw = patches_t.shape
    cout = w_flat.shape[0]
    return pl.pallas_call(
        _conv_in_lrelu_kernel,
        out_shape=jax.ShapeDtypeStruct((n, cout, hw), ACT_DTYPE),
        grid=(n,),
        in_specs=[
            pl.BlockSpec((1, k, hw), lambda i: (i, 0, 0)),
            pl.BlockSpec((cout, k), lambda i: (0, 0)),
            pl.BlockSpec((cout, 1), lambda i: (0, 0)),
            pl.BlockSpec((cout, 1), lambda i: (0, 0)),
        ],
        out_specs=pl.BlockSpec((1, cout, hw), lambda i: (i, 0, 0)),
        compiler_params=_compiler_params(1),
    )(patches_t, w_flat, gamma, beta)


def final_block_pallas(patches_t, w_flat, gamma, beta, wmap5, b5_row):
    """Block 4 (conv+IN+LeakyReLU) fused with the final Cout=1 conv."""
    n, k, hw = patches_t.shape
    cout = w_flat.shape[0]
    n_out = wmap5.shape[0]
    return pl.pallas_call(
        _conv_in_lrelu_final_kernel,
        out_shape=jax.ShapeDtypeStruct((n, 1, n_out), jnp.float32),
        grid=(n,),
        in_specs=[
            pl.BlockSpec((1, k, hw), lambda i: (i, 0, 0)),
            pl.BlockSpec((cout, k), lambda i: (0, 0)),
            pl.BlockSpec((cout, 1), lambda i: (0, 0)),
            pl.BlockSpec((cout, 1), lambda i: (0, 0)),
            pl.BlockSpec((n_out, cout, hw), lambda i: (0, 0, 0)),
            pl.BlockSpec((1, n_out), lambda i: (0, 0)),
        ],
        out_specs=pl.BlockSpec((1, 1, n_out), lambda i: (i, 0, 0)),
        compiler_params=_compiler_params(1),
    )(patches_t, w_flat, gamma, beta, wmap5, b5_row)


# ------------------------------ glue (plain JAX) ---------------------------
# TODO(synk): im2col patch extraction + embedding gather stay in XLA (fused
# under jit); a fully in-kernel strided-DMA im2col would remove the kh*kw HBM
# read amplification but has no clean BlockSpec expression here.

def im2col_t(x_nchw, kh, kw, stride, pad):
    """Channel-first patches: (N, C*kh*kw, OH*OW); index = c*kh*kw + i*kw + j."""
    xp = jnp.pad(x_nchw, ((0, 0), (0, 0), (pad, pad), (pad, pad)))
    n, c, hp, wp = xp.shape
    oh = (hp - kh) // stride + 1
    ow = (wp - kw) // stride + 1
    taps = []
    for i in range(kh):
        for j in range(kw):
            taps.append(xp[:, :, i:i + stride * oh:stride, j:j + stride * ow:stride])
    p = jnp.stack(taps, axis=2)                 # (N, C, kh*kw, OH, OW)
    return p.reshape(n, c * kh * kw, oh * ow), oh, ow


# ------------------------- parameters (deterministic) ----------------------

def init_params(key, channels_img, features_d, num_classes, img_size):
    fd = features_d
    keys = jax.random.split(key, 8)

    def conv_w(k, cout, cin, ksz):
        bound = 1.0 / (cin * ksz * ksz) ** 0.5
        return jax.random.uniform(k, (cout, cin, ksz, ksz), jnp.float32, -bound, bound)

    def conv_b(k, cout, cin, ksz):
        bound = 1.0 / (cin * ksz * ksz) ** 0.5
        return jax.random.uniform(k, (cout,), jnp.float32, -bound, bound)

    cin1 = channels_img + 1
    w1 = conv_w(keys[0], fd, cin1, 3)
    b1 = conv_b(keys[1], fd, cin1, 3)
    w2 = conv_w(keys[2], fd * 2, fd, 4)
    w3 = conv_w(keys[3], fd * 4, fd * 2, 4)
    w4 = conv_w(keys[4], fd * 8, fd * 4, 4)
    w5 = conv_w(keys[5], 1, fd * 8, 3)
    b5 = conv_b(keys[6], 1, fd * 8, 3)
    embed = jax.random.normal(keys[7], (num_classes, img_size * img_size), jnp.float32)

    # Precompute tap maps for the fused final conv: block-4 output is s4 x s4,
    # final 3x3 valid conv gives so x so outputs; wmap[p] is (C4, s4*s4).
    s4 = img_size // 8
    so = s4 - 2
    c4 = fd * 8
    w5c = w5[0]                                  # (C4, 3, 3)
    maps = []
    for oi in range(so):
        for oj in range(so):
            pm = jnp.pad(w5c, ((0, 0), (oi, s4 - 3 - oi), (oj, s4 - 3 - oj)))
            maps.append(pm.reshape(c4, s4 * s4))
    wmap5 = jnp.stack(maps, axis=0)              # (so*so, C4, s4*s4) f32

    def flat(w):                                  # (Cout, Cin*k*k), bf16 for the MXU
        return w.reshape(w.shape[0], -1).astype(ACT_DTYPE)

    return {
        "w1": flat(w1), "b1": b1.reshape(-1, 1).astype(jnp.float32),
        "w2": flat(w2),
        "g2": jnp.ones((fd * 2, 1), jnp.float32), "be2": jnp.zeros((fd * 2, 1), jnp.float32),
        "w3": flat(w3),
        "g3": jnp.ones((fd * 4, 1), jnp.float32), "be3": jnp.zeros((fd * 4, 1), jnp.float32),
        "w4": flat(w4),
        "g4": jnp.ones((fd * 8, 1), jnp.float32), "be4": jnp.zeros((fd * 8, 1), jnp.float32),
        "wmap5": wmap5, "b5": jnp.full((1, so * so), b5[0], jnp.float32),
        "embed": embed,
    }


# --------------------------------- forward ---------------------------------

def discriminator_cond_forward(params, x_nchw, labels):
    n, _, h, w = x_nchw.shape

    # embedding lookup + concat as an extra channel (NCHW throughout)
    emb = params["embed"][labels].reshape(n, 1, h, w)
    x = jnp.concatenate([x_nchw.astype(jnp.float32), emb], axis=1).astype(ACT_DTYPE)

    # Conv2d(C+1, fd, 3, 1, 1) + bias + LeakyReLU(0.2)
    p1, oh, ow = im2col_t(x, 3, 3, 1, 1)
    a = conv1_pallas(p1, params["w1"], params["b1"])          # (N, fd, H*W) bf16
    a = a.reshape(n, -1, oh, ow)

    # disc_blocks 2-3: Conv(4,2,1, no bias) -> InstanceNorm(affine) -> LeakyReLU
    for i in (2, 3):
        pt, oh, ow = im2col_t(a, 4, 4, 2, 1)
        a = disc_block_pallas(pt, params[f"w{i}"], params[f"g{i}"], params[f"be{i}"])
        a = a.reshape(n, -1, oh, ow)

    # disc_block 4 fused with the final Conv2d(fd*8, 1, 3, 1, 0) + bias
    pt, oh, ow = im2col_t(a, 4, 4, 2, 1)
    out = final_block_pallas(pt, params["w4"], params["g4"], params["be4"],
                             params["wmap5"], params["b5"])   # (N, 1, so*so) f32
    so = oh - 2
    return out.reshape(n, 1, so, so)                          # NCHW


# ----------------------------------- main -----------------------------------

if __name__ == "__main__":
    # small shapes: batch=2, channels_img=3, features_d=8, num_classes=10, img_size=32
    # (32 -> 32 -> 16 -> 8 -> 4 -> final valid 3x3 -> 2)
    batch, channels_img, features_d, num_classes, img_size = 2, 3, 8, 10, 32

    key = jax.random.PRNGKey(0)
    k_param, k_x, k_lbl = jax.random.split(key, 3)

    params = init_params(k_param, channels_img, features_d, num_classes, img_size)
    x = jax.random.normal(k_x, (batch, channels_img, img_size, img_size), jnp.float32)
    labels = jax.random.randint(k_lbl, (batch,), 0, num_classes)

    fwd = jax.jit(discriminator_cond_forward)
    out = fwd(params, x, labels)
    out = jax.block_until_ready(out)

    expected_shape = (batch, 1, 2, 2)
    assert out.shape == expected_shape, (out.shape, expected_shape)
    assert bool(jnp.all(jnp.isfinite(out)))
    print("KERNEL_OK")
</pallas_src>

<mosaic_0001>
module attributes {stable_mosaic.version = 11 : i64} {
  func.func @_conv_bias_lrelu_kernel(%arg0: i32, %arg1: i32, %arg2: memref<1x36x512xbf16, #tpu.memory_space<vmem>>, %arg3: memref<8x36xbf16, #tpu.memory_space<vmem>>, %arg4: memref<8x1xf32, #tpu.memory_space<vmem>>, %arg5: memref<1x8x512xbf16, #tpu.memory_space<vmem>>) attributes {dimension_semantics = [#tpu.dimension_semantics<parallel>, #tpu.dimension_semantics<parallel>], iteration_bounds = array<i64: 2, 2>, scalar_prefetch = 0 : i64, scratch_operands = 0 : i64, tpu.core_type = #tpu.core_type<tc>, window_params = [{transform_indices = @transform_0, window_bounds = array<i64: 1, 36, 512>}, {pipeline_mode = #tpu.pipeline_mode<synchronous>, transform_indices = @transform_1, window_bounds = array<i64: 8, 36>}, {pipeline_mode = #tpu.pipeline_mode<synchronous>, transform_indices = @transform_2, window_bounds = array<i64: 8, 1>}, {transform_indices = @transform_3, window_bounds = array<i64: 1, 8, 512>}]} {
    %c0 = arith.constant 0 : index
    %c0_0 = arith.constant 0 : index
    %0 = vector.load %arg3[%c0, %c0_0] : memref<8x36xbf16, #tpu.memory_space<vmem>>, vector<8x36xbf16>
    %c0_1 = arith.constant 0 : index
    %c0_2 = arith.constant 0 : index
    %c0_3 = arith.constant 0 : index
    %1 = vector.load %arg2[%c0_1, %c0_2, %c0_3] : memref<1x36x512xbf16, #tpu.memory_space<vmem>>, vector<1x36x512xbf16>
    %2 = vector.shape_cast %1 : vector<1x36x512xbf16> to vector<36x512xbf16>
    %cst = arith.constant dense<0.000000e+00> : vector<8x512xf32>
    %3 = tpu.matmul %0, %2, %cst {dimension_numbers = #tpu.dot_dimension_numbers<[1], [0], [0], [1], [0, 0, 1, 1], [], []>} : vector<8x36xbf16>, vector<36x512xbf16>, vector<8x512xf32> -> vector<8x512xf32>
    %c0_4 = arith.constant 0 : index
    %c0_5 = arith.constant 0 : index
    %4 = vector.load %arg4[%c0_4, %c0_5] : memref<8x1xf32, #tpu.memory_space<vmem>>, vector<8x1xf32>
    %5 = vector.broadcast %4 : vector<8x1xf32> to vector<8x512xf32>
    %6 = arith.addf %3, %5 : vector<8x512xf32>
    %cst_6 = arith.constant 0.000000e+00 : f32
    %7 = vector.broadcast %cst_6 : f32 to vector<8x512xf32>
    %8 = arith.cmpf oge, %6, %7 : vector<8x512xf32>
    %cst_7 = arith.constant 2.000000e-01 : f32
    %9 = vector.broadcast %cst_7 : f32 to vector<8x512xf32>
    %10 = arith.mulf %9, %6 : vector<8x512xf32>
    %11 = arith.select %8, %6, %10 : vector<8x512xi1>, vector<8x512xf32>
    %12 = arith.truncf %11 : vector<8x512xf32> to vector<8x512xbf16>
    %c0_8 = arith.constant 0 : index
    %c0_9 = arith.constant 0 : index
    %c0_10 = arith.constant 0 : index
    %13 = vector.load %arg5[%c0_8, %c0_9, %c0_10] : memref<1x8x512xbf16, #tpu.memory_space<vmem>>, vector<1x8x512xbf16>
    %14 = vector.shape_cast %13 : vector<1x8x512xbf16> to vector<8x512xbf16>
    %15 = vector.shape_cast %12 : vector<8x512xbf16> to vector<1x8x512xbf16>
    tpu.vector_store %arg5[%c0_8, %c0_9, %c0_10], %15 {strides = array<i32>} : memref<1x8x512xbf16, #tpu.memory_space<vmem>>, vector<1x8x512xbf16>,
    return
  }
  func.func @transform_0(%arg0: i32, %arg1: i32) -> (i32, i32, i32) {
    %c0_i32 = arith.constant 0 : i32
    %c0_i32_0 = arith.constant 0 : i32
    return %arg0, %c0_i32, %arg1 : i32, i32, i32
  }
  func.func @transform_1(%arg0: i32, %arg1: i32) -> (i32, i32) {
    %c0_i32 = arith.constant 0 : i32
    %c0_i32_0 = arith.constant 0 : i32
    %c0_i32_1 = arith.constant 0 : i32
    return %c0_i32, %c0_i32_0 : i32, i32
  }
  func.func @transform_2(%arg0: i32, %arg1: i32) -> (i32, i32) {
    %c0_i32 = arith.constant 0 : i32
    %c0_i32_0 = arith.constant 0 : i32
    %c0_i32_1 = arith.constant 0 : i32
    return %c0_i32, %c0_i32_0 : i32, i32
  }
  func.func @transform_3(%arg0: i32, %arg1: i32) -> (i32, i32, i32) {
    %c0_i32 = arith.constant 0 : i32
    %c0_i32_0 = arith.constant 0 : i32
    return %arg0, %c0_i32, %arg1 : i32, i32, i32
  }
}

module attributes {stable_mosaic.version = 11 : i64} {
  func.func @_conv_in_lrelu_kernel(%arg0: i32, %arg1: memref<1x128x256xbf16, #tpu.memory_space<vmem>>, %arg2: memref<16x128xbf16, #tpu.memory_space<vmem>>, %arg3: memref<16x1xf32, #tpu.memory_space<vmem>>, %arg4: memref<16x1xf32, #tpu.memory_space<vmem>>, %arg5: memref<1x16x256xbf16, #tpu.memory_space<vmem>>) attributes {dimension_semantics = [#tpu.dimension_semantics<parallel>], iteration_bounds = array<i64: 2>, scalar_prefetch = 0 : i64, scratch_operands = 0 : i64, tpu.core_type = #tpu.core_type<tc>, window_params = [{transform_indices = @transform_0, window_bounds = array<i64: 1, 128, 256>}, {pipeline_mode = #tpu.pipeline_mode<synchronous>, transform_indices = @transform_1, window_bounds = array<i64: 16, 128>}, {pipeline_mode = #tpu.pipeline_mode<synchronous>, transform_indices = @transform_2, window_bounds = array<i64: 16, 1>}, {pipeline_mode = #tpu.pipeline_mode<synchronous>, transform_indices = @transform_3, window_bounds = array<i64: 16, 1>}, {transform_indices = @transform_4, window_bounds = array<i64: 1, 16, 256>}]} {
    %c0 = arith.constant 0 : index
    %c0_0 = arith.constant 0 : index
    %0 = vector.load %arg2[%c0, %c0_0] : memref<16x128xbf16, #tpu.memory_space<vmem>>, vector<16x128xbf16>
    %c0_1 = arith.constant 0 : index
    %c0_2 = arith.constant 0 : index
    %c0_3 = arith.constant 0 : index
    %1 = vector.load %arg1[%c0_1, %c0_2, %c0_3] : memref<1x128x256xbf16, #tpu.memory_space<vmem>>, vector<1x128x256xbf16>
    %2 = vector.shape_cast %1 : vector<1x128x256xbf16> to vector<128x256xbf16>
    %cst = arith.constant dense<0.000000e+00> : vector<16x256xf32>
    %3 = tpu.matmul %0, %2, %cst {dimension_numbers = #tpu.dot_dimension_numbers<[1], [0], [0], [1], [0, 0, 1, 1], [], []>} : vector<16x128xbf16>, vector<128x256xbf16>, vector<16x256xf32> -> vector<16x256xf32>
    %cst_4 = arith.constant dense<0.000000e+00> : vector<16xf32>
    %4 = vector.multi_reduction <add>, %3, %cst_4 [1] : vector<16x256xf32> to vector<16xf32>
    %5 = vector.shape_cast %4 : vector<16xf32> to vector<16x1xf32>
    %cst_5 = arith.constant 2.560000e+02 : f32
    %6 = vector.broadcast %cst_5 : f32 to vector<16x1xf32>
    %7 = arith.divf %5, %6 : vector<16x1xf32>
    %8 = vector.broadcast %7 : vector<16x1xf32> to vector<16x256xf32>
    %9 = arith.subf %3, %8 : vector<16x256xf32>
    %10 = arith.mulf %9, %9 : vector<16x256xf32>
    %cst_6 = arith.constant dense<0.000000e+00> : vector<16xf32>
    %11 = vector.multi_reduction <add>, %10, %cst_6 [1] : vector<16x256xf32> to vector<16xf32>
    %12 = vector.shape_cast %11 : vector<16xf32> to vector<16x1xf32>
    %cst_7 = arith.constant 2.560000e+02 : f32
    %13 = vector.broadcast %cst_7 : f32 to vector<16x1xf32>
    %14 = arith.divf %12, %13 : vector<16x1xf32>
    %15 = vector.broadcast %7 : vector<16x1xf32> to vector<16x256xf32>
    %16 = arith.subf %3, %15 : vector<16x256xf32>
    %cst_8 = arith.constant 9.99999974E-6 : f32
    %17 = vector.broadcast %cst_8 : f32 to vector<16x1xf32>
    %18 = arith.addf %14, %17 : vector<16x1xf32>
    %19 = math.rsqrt %18 : vector<16x1xf32>
    %20 = vector.broadcast %19 : vector<16x1xf32> to vector<16x256xf32>
    %21 = arith.mulf %16, %20 : vector<16x256xf32>
    %c0_9 = arith.constant 0 : index
    %c0_10 = arith.constant 0 : index
    %22 = vector.load %arg3[%c0_9, %c0_10] : memref<16x1xf32, #tpu.memory_space<vmem>>, vector<16x1xf32>
    %23 = vector.broadcast %22 : vector<16x1xf32> to vector<16x256xf32>
    %24 = arith.mulf %21, %23 : vector<16x256xf32>
    %c0_11 = arith.constant 0 : index
    %c0_12 = arith.constant 0 : index
    %25 = vector.load %arg4[%c0_11, %c0_12] : memref<16x1xf32, #tpu.memory_space<vmem>>, vector<16x1xf32>
    %26 = vector.broadcast %25 : vector<16x1xf32> to vector<16x256xf32>
    %27 = arith.addf %24, %26 : vector<16x256xf32>
    %cst_13 = arith.constant 0.000000e+00 : f32
    %28 = vector.broadcast %cst_13 : f32 to vector<16x256xf32>
    %29 = arith.cmpf oge, %27, %28 : vector<16x256xf32>
    %cst_14 = arith.constant 2.000000e-01 : f32
    %30 = vector.broadcast %cst_14 : f32 to vector<16x256xf32>
    %31 = arith.mulf %30, %27 : vector<16x256xf32>
    %32 = arith.select %29, %27, %31 : vector<16x256xi1>, vector<16x256xf32>
    %33 = arith.truncf %32 : vector<16x256xf32> to vector<16x256xbf16>
    %c0_15 = arith.constant 0 : index
    %c0_16 = arith.constant 0 : index
    %c0_17 = arith.constant 0 : index
    %34 = vector.load %arg5[%c0_15, %c0_16, %c0_17] : memref<1x16x256xbf16, #tpu.memory_space<vmem>>, vector<1x16x256xbf16>
    %35 = vector.shape_cast %34 : vector<1x16x256xbf16> to vector<16x256xbf16>
    %36 = vector.shape_cast %33 : vector<16x256xbf16> to vector<1x16x256xbf16>
    tpu.vector_store %arg5[%c0_15, %c0_16, %c0_17], %36 {strides = array<i32>} : memref<1x16x256xbf16, #tpu.memory_space<vmem>>, vector<1x16x256xbf16>,
    return
  }
  func.func @transform_0(%arg0: i32) -> (i32, i32, i32) {
    %c0_i32 = arith.constant 0 : i32
    %c0_i32_0 = arith.constant 0 : i32
    %c0_i32_1 = arith.constant 0 : i32
    return %arg0, %c0_i32, %c0_i32_0 : i32, i32, i32
  }
  func.func @transform_1(%arg0: i32) -> (i32, i32) {
    %c0_i32 = arith.constant 0 : i32
    %c0_i32_0 = arith.constant 0 : i32
    %c0_i32_1 = arith.constant 0 : i32
    return %c0_i32, %c0_i32_0 : i32, i32
  }
  func.func @transform_2(%arg0: i32) -> (i32, i32) {
    %c0_i32 = arith.constant 0 : i32
    %c0_i32_0 = arith.constant 0 : i32
    %c0_i32_1 = arith.constant 0 : i32
    return %c0_i32, %c0_i32_0 : i32, i32
  }
  func.func @transform_3(%arg0: i32) -> (i32, i32) {
    %c0_i32 = arith.constant 0 : i32
    %c0_i32_0 = arith.constant 0 : i32
    %c0_i32_1 = arith.constant 0 : i32
    return %c0_i32, %c0_i32_0 : i32, i32
  }
  func.func @transform_4(%arg0: i32) -> (i32, i32, i32) {
    %c0_i32 = arith.constant 0 : i32
    %c0_i32_0 = arith.constant 0 : i32
    %c0_i32_1 = arith.constant 0 : i32
    return %arg0, %c0_i32, %c0_i32_0 : i32, i32, i32
  }
}

module attributes {stable_mosaic.version = 11 : i64} {
  func.func @_conv_in_lrelu_kernel(%arg0: i32, %arg1: memref<1x256x64xbf16, #tpu.memory_space<vmem>>, %arg2: memref<32x256xbf16, #tpu.memory_space<vmem>>, %arg3: memref<32x1xf32, #tpu.memory_space<vmem>>, %arg4: memref<32x1xf32, #tpu.memory_space<vmem>>, %arg5: memref<1x32x64xbf16, #tpu.memory_space<vmem>>) attributes {dimension_semantics = [#tpu.dimension_semantics<parallel>], iteration_bounds = array<i64: 2>, scalar_prefetch = 0 : i64, scratch_operands = 0 : i64, tpu.core_type = #tpu.core_type<tc>, window_params = [{transform_indices = @transform_0, window_bounds = array<i64: 1, 256, 64>}, {pipeline_mode = #tpu.pipeline_mode<synchronous>, transform_indices = @transform_1, window_bounds = array<i64: 32, 256>}, {pipeline_mode = #tpu.pipeline_mode<synchronous>, transform_indices = @transform_2, window_bounds = array<i64: 32, 1>}, {pipeline_mode = #tpu.pipeline_mode<synchronous>, transform_indices = @transform_3, window_bounds = array<i64: 32, 1>}, {transform_indices = @transform_4, window_bounds = array<i64: 1, 32, 64>}]} {
    %c0 = arith.constant 0 : index
    %c0_0 = arith.constant 0 : index
    %0 = vector.load %arg2[%c0, %c0_0] : memref<32x256xbf16, #tpu.memory_space<vmem>>, vector<32x256xbf16>
    %c0_1 = arith.constant 0 : index
    %c0_2 = arith.constant 0 : index
    %c0_3 = arith.constant 0 : index
    %1 = vector.load %arg1[%c0_1, %c0_2, %c0_3] : memref<1x256x64xbf16, #tpu.memory_space<vmem>>, vector<1x256x64xbf16>
    %2 = vector.shape_cast %1 : vector<1x256x64xbf16> to vector<256x64xbf16>
    %cst = arith.constant dense<0.000000e+00> : vector<32x64xf32>
    %3 = tpu.matmul %0, %2, %cst {dimension_numbers = #tpu.dot_dimension_numbers<[1], [0], [0], [1], [0, 0, 1, 1], [], []>} : vector<32x256xbf16>, vector<256x64xbf16>, vector<32x64xf32> -> vector<32x64xf32>
    %cst_4 = arith.constant dense<0.000000e+00> : vector<32xf32>
    %4 = vector.multi_reduction <add>, %3, %cst_4 [1] : vector<32x64xf32> to vector<32xf32>
    %5 = vector.shape_cast %4 : vector<32xf32> to vector<32x1xf32>
    %cst_5 = arith.constant 6.400000e+01 : f32
    %6 = vector.broadcast %cst_5 : f32 to vector<32x1xf32>
    %7 = arith.divf %5, %6 : vector<32x1xf32>
    %8 = vector.broadcast %7 : vector<32x1xf32> to vector<32x64xf32>
    %9 = arith.subf %3, %8 : vector<32x64xf32>
    %10 = arith.mulf %9, %9 : vector<32x64xf32>
    %cst_6 = arith.constant dense<0.000000e+00> : vector<32xf32>
    %11 = vector.multi_reduction <add>, %10, %cst_6 [1] : vector<32x64xf32> to vector<32xf32>
    %12 = vector.shape_cast %11 : vector<32xf32> to vector<32x1xf32>
    %cst_7 = arith.constant 6.400000e+01 : f32
    %13 = vector.broadcast %cst_7 : f32 to vector<32x1xf32>
    %14 = arith.divf %12, %13 : vector<32x1xf32>
    %15 = vector.broadcast %7 : vector<32x1xf32> to vector<32x64xf32>
    %16 = arith.subf %3, %15 : vector<32x64xf32>
    %cst_8 = arith.constant 9.99999974E-6 : f32
    %17 = vector.broadcast %cst_8 : f32 to vector<32x1xf32>
    %18 = arith.addf %14, %17 : vector<32x1xf32>
    %19 = math.rsqrt %18 : vector<32x1xf32>
    %20 = vector.broadcast %19 : vector<32x1xf32> to vector<32x64xf32>
    %21 = arith.mulf %16, %20 : vector<32x64xf32>
    %c0_9 = arith.constant 0 : index
    %c0_10 = arith.constant 0 : index
    %22 = vector.load %arg3[%c0_9, %c0_10] : memref<32x1xf32, #tpu.memory_space<vmem>>, vector<32x1xf32>
    %23 = vector.broadcast %22 : vector<32x1xf32> to vector<32x64xf32>
    %24 = arith.mulf %21, %23 : vector<32x64xf32>
    %c0_11 = arith.constant 0 : index
    %c0_12 = arith.constant 0 : index
    %25 = vector.load %arg4[%c0_11, %c0_12] : memref<32x1xf32, #tpu.memory_space<vmem>>, vector<32x1xf32>
    %26 = vector.broadcast %25 : vector<32x1xf32> to vector<32x64xf32>
    %27 = arith.addf %24, %26 : vector<32x64xf32>
    %cst_13 = arith.constant 0.000000e+00 : f32
    %28 = vector.broadcast %cst_13 : f32 to vector<32x64xf32>
    %29 = arith.cmpf oge, %27, %28 : vector<32x64xf32>
    %cst_14 = arith.constant 2.000000e-01 : f32
    %30 = vector.broadcast %cst_14 : f32 to vector<32x64xf32>
    %31 = arith.mulf %30, %27 : vector<32x64xf32>
    %32 = arith.select %29, %27, %31 : vector<32x64xi1>, vector<32x64xf32>
    %33 = arith.truncf %32 : vector<32x64xf32> to vector<32x64xbf16>
    %c0_15 = arith.constant 0 : index
    %c0_16 = arith.constant 0 : index
    %c0_17 = arith.constant 0 : index
    %34 = vector.load %arg5[%c0_15, %c0_16, %c0_17] : memref<1x32x64xbf16, #tpu.memory_space<vmem>>, vector<1x32x64xbf16>
    %35 = vector.shape_cast %34 : vector<1x32x64xbf16> to vector<32x64xbf16>
    %36 = vector.shape_cast %33 : vector<32x64xbf16> to vector<1x32x64xbf16>
    tpu.vector_store %arg5[%c0_15, %c0_16, %c0_17], %36 {strides = array<i32>} : memref<1x32x64xbf16, #tpu.memory_space<vmem>>, vector<1x32x64xbf16>,
    return
  }
  func.func @transform_0(%arg0: i32) -> (i32, i32, i32) {
    %c0_i32 = arith.constant 0 : i32
    %c0_i32_0 = arith.constant 0 : i32
    %c0_i32_1 = arith.constant 0 : i32
    return %arg0, %c0_i32, %c0_i32_0 : i32, i32, i32
  }
  func.func @transform_1(%arg0: i32) -> (i32, i32) {
    %c0_i32 = arith.constant 0 : i32
    %c0_i32_0 = arith.constant 0 : i32
    %c0_i32_1 = arith.constant 0 : i32
    return %c0_i32, %c0_i32_0 : i32, i32
  }
  func.func @transform_2(%arg0: i32) -> (i32, i32) {
    %c0_i32 = arith.constant 0 : i32
    %c0_i32_0 = arith.constant 0 : i32
    %c0_i32_1 = arith.constant 0 : i32
    return %c0_i32, %c0_i32_0 : i32, i32
  }
  func.func @transform_3(%arg0: i32) -> (i32, i32) {
    %c0_i32 = arith.constant 0 : i32
    %c0_i32_0 = arith.constant 0 : i32
    %c0_i32_1 = arith.constant 0 : i32
    return %c0_i32, %c0_i32_0 : i32, i32
  }
  func.func @transform_4(%arg0: i32) -> (i32, i32, i32) {
    %c0_i32 = arith.constant 0 : i32
    %c0_i32_0 = arith.constant 0 : i32
    %c0_i32_1 = arith.constant 0 : i32
    return %arg0, %c0_i32, %c0_i32_0 : i32, i32, i32
  }
}

module attributes {stable_mosaic.version = 11 : i64} {
  func.func @_conv_in_lrelu_final_kernel(%arg0: i32, %arg1: memref<1x512x16xbf16, #tpu.memory_space<vmem>>, %arg2: memref<64x512xbf16, #tpu.memory_space<vmem>>, %arg3: memref<64x1xf32, #tpu.memory_space<vmem>>, %arg4: memref<64x1xf32, #tpu.memory_space<vmem>>, %arg5: memref<4x64x16xf32, #tpu.memory_space<vmem>>, %arg6: memref<1x4xf32, #tpu.memory_space<vmem>>, %arg7: memref<1x1x4xf32, #tpu.memory_space<vmem>>) attributes {dimension_semantics = [#tpu.dimension_semantics<parallel>], iteration_bounds = array<i64: 2>, scalar_prefetch = 0 : i64, scratch_operands = 0 : i64, tpu.core_type = #tpu.core_type<tc>, window_params = [{transform_indices = @transform_0, window_bounds = array<i64: 1, 512, 16>}, {pipeline_mode = #tpu.pipeline_mode<synchronous>, transform_indices = @transform_1, window_bounds = array<i64: 64, 512>}, {pipeline_mode = #tpu.pipeline_mode<synchronous>, transform_indices = @transform_2, window_bounds = array<i64: 64, 1>}, {pipeline_mode = #tpu.pipeline_mode<synchronous>, transform_indices = @transform_3, window_bounds = array<i64: 64, 1>}, {pipeline_mode = #tpu.pipeline_mode<synchronous>, transform_indices = @transform_4, window_bounds = array<i64: 4, 64, 16>}, {pipeline_mode = #tpu.pipeline_mode<synchronous>, transform_indices = @transform_5, window_bounds = array<i64: 1, 4>}, {transform_indices = @transform_6, window_bounds = array<i64: 1, 1, 4>}]} {
    %c0 = arith.constant 0 : index
    %c0_0 = arith.constant 0 : index
    %0 = vector.load %arg2[%c0, %c0_0] : memref<64x512xbf16, #tpu.memory_space<vmem>>, vector<64x512xbf16>
    %c0_1 = arith.constant 0 : index
    %c0_2 = arith.constant 0 : index
    %c0_3 = arith.constant 0 : index
    %1 = vector.load %arg1[%c0_1, %c0_2, %c0_3] : memref<1x512x16xbf16, #tpu.memory_space<vmem>>, vector<1x512x16xbf16>
    %2 = vector.shape_cast %1 : vector<1x512x16xbf16> to vector<512x16xbf16>
    %cst = arith.constant dense<0.000000e+00> : vector<64x16xf32>
    %3 = tpu.matmul %0, %2, %cst {dimension_numbers = #tpu.dot_dimension_numbers<[1], [0], [0], [1], [0, 0, 1, 1], [], []>} : vector<64x512xbf16>, vector<512x16xbf16>, vector<64x16xf32> -> vector<64x16xf32>
    %cst_4 = arith.constant dense<0.000000e+00> : vector<64xf32>
    %4 = vector.multi_reduction <add>, %3, %cst_4 [1] : vector<64x16xf32> to vector<64xf32>
    %5 = vector.shape_cast %4 : vector<64xf32> to vector<64x1xf32>
    %cst_5 = arith.constant 1.600000e+01 : f32
    %6 = vector.broadcast %cst_5 : f32 to vector<64x1xf32>
    %7 = arith.divf %5, %6 : vector<64x1xf32>
    %8 = vector.broadcast %7 : vector<64x1xf32> to vector<64x16xf32>
    %9 = arith.subf %3, %8 : vector<64x16xf32>
    %10 = arith.mulf %9, %9 : vector<64x16xf32>
    %cst_6 = arith.constant dense<0.000000e+00> : vector<64xf32>
    %11 = vector.multi_reduction <add>, %10, %cst_6 [1] : vector<64x16xf32> to vector<64xf32>
    %12 = vector.shape_cast %11 : vector<64xf32> to vector<64x1xf32>
    %cst_7 = arith.constant 1.600000e+01 : f32
    %13 = vector.broadcast %cst_7 : f32 to vector<64x1xf32>
    %14 = arith.divf %12, %13 : vector<64x1xf32>
    %15 = vector.broadcast %7 : vector<64x1xf32> to vector<64x16xf32>
    %16 = arith.subf %3, %15 : vector<64x16xf32>
    %cst_8 = arith.constant 9.99999974E-6 : f32
    %17 = vector.broadcast %cst_8 : f32 to vector<64x1xf32>
    %18 = arith.addf %14, %17 : vector<64x1xf32>
    %19 = math.rsqrt %18 : vector<64x1xf32>
    %20 = vector.broadcast %19 : vector<64x1xf32> to vector<64x16xf32>
    %21 = arith.mulf %16, %20 : vector<64x16xf32>
    %c0_9 = arith.constant 0 : index
    %c0_10 = arith.constant 0 : index
    %22 = vector.load %arg3[%c0_9, %c0_10] : memref<64x1xf32, #tpu.memory_space<vmem>>, vector<64x1xf32>
    %23 = vector.broadcast %22 : vector<64x1xf32> to vector<64x16xf32>
    %24 = arith.mulf %21, %23 : vector<64x16xf32>
    %c0_11 = arith.constant 0 : index
    %c0_12 = arith.constant 0 : index
    %25 = vector.load %arg4[%c0_11, %c0_12] : memref<64x1xf32, #tpu.memory_space<vmem>>, vector<64x1xf32>
    %26 = vector.broadcast %25 : vector<64x1xf32> to vector<64x16xf32>
    %27 = arith.addf %24, %26 : vector<64x16xf32>
    %cst_13 = arith.constant 0.000000e+00 : f32
    %28 = vector.broadcast %cst_13 : f32 to vector<64x16xf32>
    %29 = arith.cmpf oge, %27, %28 : vector<64x16xf32>
    %cst_14 = arith.constant 2.000000e-01 : f32
    %30 = vector.broadcast %cst_14 : f32 to vector<64x16xf32>
    %31 = arith.mulf %30, %27 : vector<64x16xf32>
    %32 = arith.select %29, %27, %31 : vector<64x16xi1>, vector<64x16xf32>
    %33 = tpu.iota {dimensions = array<i32: 1>} : vector<1x4xi32>
    %cst_15 = arith.constant 0.000000e+00 : f32
    %34 = vector.broadcast %cst_15 : f32 to vector<1x4xf32>
    %c0_16 = arith.constant 0 : index
    %c0_17 = arith.constant 0 : index
    %c0_18 = arith.constant 0 : index
    %35 = vector.load %arg5[%c0_16, %c0_17, %c0_18] : memref<4x64x16xf32, #tpu.memory_space<vmem>>, vector<1x64x16xf32>
    %36 = vector.shape_cast %35 : vector<1x64x16xf32> to vector<64x16xf32>
    %37 = arith.mulf %32, %36 : vector<64x16xf32>
    %38 = vector.shape_cast %37 : vector<64x16xf32> to vector<1x64x16xf32>
    %cst_19 = arith.constant dense<0.000000e+00> : vector<1xf32>
    %39 = vector.multi_reduction <add>, %38, %cst_19 [1, 2] : vector<1x64x16xf32> to vector<1xf32>
    %40 = vector.shape_cast %39 : vector<1xf32> to vector<1x1x1xf32>
    %41 = vector.extract %40[0, 0, 0] : f32 from vector<1x1x1xf32>
    %c0_i32 = arith.constant 0 : i32
    %42 = vector.broadcast %c0_i32 : i32 to vector<1x4xi32>
    %43 = arith.cmpi eq, %33, %42 : vector<1x4xi32>
    %44 = arith.extui %43 : vector<1x4xi1> to vector<1x4xi32>
    %45 = arith.sitofp %44 : vector<1x4xi32> to vector<1x4xf32>
    %46 = vector.broadcast %41 : f32 to vector<1x4xf32>
    %47 = arith.mulf %46, %45 : vector<1x4xf32>
    %48 = arith.addf %34, %47 : vector<1x4xf32>
    %c1 = arith.constant 1 : index
    %c0_20 = arith.constant 0 : index
    %c0_21 = arith.constant 0 : index
    %49 = vector.load %arg5[%c1, %c0_20, %c0_21] : memref<4x64x16xf32, #tpu.memory_space<vmem>>, vector<1x64x16xf32>
    %50 = vector.shape_cast %49 : vector<1x64x16xf32> to vector<64x16xf32>
    %51 = arith.mulf %32, %50 : vector<64x16xf32>
    %52 = vector.shape_cast %51 : vector<64x16xf32> to vector<1x64x16xf32>
    %cst_22 = arith.constant dense<0.000000e+00> : vector<1xf32>
    %53 = vector.multi_reduction <add>, %52, %cst_22 [1, 2] : vector<1x64x16xf32> to vector<1xf32>
    %54 = vector.shape_cast %53 : vector<1xf32> to vector<1x1x1xf32>
    %55 = vector.extract %54[0, 0, 0] : f32 from vector<1x1x1xf32>
    %c1_i32 = arith.constant 1 : i32
    %56 = vector.broadcast %c1_i32 : i32 to vector<1x4xi32>
    %57 = arith.cmpi eq, %33, %56 : vector<1x4xi32>
    %58 = arith.extui %57 : vector<1x4xi1> to vector<1x4xi32>
    %59 = arith.sitofp %58 : vector<1x4xi32> to vector<1x4xf32>
    %60 = vector.broadcast %55 : f32 to vector<1x4xf32>
    %61 = arith.mulf %60, %59 : vector<1x4xf32>
    %62 = arith.addf %48, %61 : vector<1x4xf32>
    %c2 = arith.constant 2 : index
    %c0_23 = arith.constant 0 : index
    %c0_24 = arith.constant 0 : index
    %63 = vector.load %arg5[%c2, %c0_23, %c0_24] : memref<4x64x16xf32, #tpu.memory_space<vmem>>, vector<1x64x16xf32>
    %64 = vector.shape_cast %63 : vector<1x64x16xf32> to vector<64x16xf32>
    %65 = arith.mulf %32, %64 : vector<64x16xf32>
    %66 = vector.shape_cast %65 : vector<64x16xf32> to vector<1x64x16xf32>
    %cst_25 = arith.constant dense<0.000000e+00> : vector<1xf32>
    %67 = vector.multi_reduction <add>, %66, %cst_25 [1, 2] : vector<1x64x16xf32> to vector<1xf32>
    %68 = vector.shape_cast %67 : vector<1xf32> to vector<1x1x1xf32>
    %69 = vector.extract %68[0, 0, 0] : f32 from vector<1x1x1xf32>
    %c2_i32 = arith.constant 2 : i32
    %70 = vector.broadcast %c2_i32 : i32 to vector<1x4xi32>
    %71 = arith.cmpi eq, %33, %70 : vector<1x4xi32>
    %72 = arith.extui %71 : vector<1x4xi1> to vector<1x4xi32>
    %73 = arith.sitofp %72 : vector<1x4xi32> to vector<1x4xf32>
    %74 = vector.broadcast %69 : f32 to vector<1x4xf32>
    %75 = arith.mulf %74, %73 : vector<1x4xf32>
    %76 = arith.addf %62, %75 : vector<1x4xf32>
    %c3 = arith.constant 3 : index
    %c0_26 = arith.constant 0 : index
    %c0_27 = arith.constant 0 : index
    %77 = vector.load %arg5[%c3, %c0_26, %c0_27] : memref<4x64x16xf32, #tpu.memory_space<vmem>>, vector<1x64x16xf32>
    %78 = vector.shape_cast %77 : vector<1x64x16xf32> to vector<64x16xf32>
    %79 = arith.mulf %32, %78 : vector<64x16xf32>
    %80 = vector.shape_cast %79 : vector<64x16xf32> to vector<1x64x16xf32>
    %cst_28 = arith.constant dense<0.000000e+00> : vector<1xf32>
    %81 = vector.multi_reduction <add>, %80, %cst_28 [1, 2] : vector<1x64x16xf32> to vector<1xf32>
    %82 = vector.shape_cast %81 : vector<1xf32> to vector<1x1x1xf32>
    %83 = vector.extract %82[0, 0, 0] : f32 from vector<1x1x1xf32>
    %c3_i32 = arith.constant 3 : i32
    %84 = vector.broadcast %c3_i32 : i32 to vector<1x4xi32>
    %85 = arith.cmpi eq, %33, %84 : vector<1x4xi32>
    %86 = arith.extui %85 : vector<1x4xi1> to vector<1x4xi32>
    %87 = arith.sitofp %86 : vector<1x4xi32> to vector<1x4xf32>
    %88 = vector.broadcast %83 : f32 to vector<1x4xf32>
    %89 = arith.mulf %88, %87 : vector<1x4xf32>
    %90 = arith.addf %76, %89 : vector<1x4xf32>
    %c0_29 = arith.constant 0 : index
    %c0_30 = arith.constant 0 : index
    %91 = vector.load %arg6[%c0_29, %c0_30] : memref<1x4xf32, #tpu.memory_space<vmem>>, vector<1x4xf32>
    %92 = arith.addf %90, %91 : vector<1x4xf32>
    %c0_31 = arith.constant 0 : index
    %c0_32 = arith.constant 0 : index
    %c0_33 = arith.constant 0 : index
    %93 = vector.load %arg7[%c0_31, %c0_32, %c0_33] : memref<1x1x4xf32, #tpu.memory_space<vmem>>, vector<1x1x4xf32>
    %94 = vector.shape_cast %93 : vector<1x1x4xf32> to vector<1x4xf32>
    %95 = vector.shape_cast %92 : vector<1x4xf32> to vector<1x1x4xf32>
    tpu.vector_store %arg7[%c0_31, %c0_32, %c0_33], %95 {strides = array<i32>} : memref<1x1x4xf32, #tpu.memory_space<vmem>>, vector<1x1x4xf32>,
    return
  }
  func.func @transform_0(%arg0: i32) -> (i32, i32, i32) {
    %c0_i32 = arith.constant 0 : i32
    %c0_i32_0 = arith.constant 0 : i32
    %c0_i32_1 = arith.constant 0 : i32
    return %arg0, %c0_i32, %c0_i32_0 : i32, i32, i32
  }
  func.func @transform_1(%arg0: i32) -> (i32, i32) {
    %c0_i32 = arith.constant 0 : i32
    %c0_i32_0 = arith.constant 0 : i32
    %c0_i32_1 = arith.constant 0 : i32
    return %c0_i32, %c0_i32_0 : i32, i32
  }
  func.func @transform_2(%arg0: i32) -> (i32, i32) {
    %c0_i32 = arith.constant 0 : i32
    %c0_i32_0 = arith.constant 0 : i32
    %c0_i32_1 = arith.constant 0 : i32
    return %c0_i32, %c0_i32_0 : i32, i32
  }
  func.func @transform_3(%arg0: i32) -> (i32, i32) {
    %c0_i32 = arith.constant 0 : i32
    %c0_i32_0 = arith.constant 0 : i32
    %c0_i32_1 = arith.constant 0 : i32
    return %c0_i32, %c0_i32_0 : i32, i32
  }
  func.func @transform_4(%arg0: i32) -> (i32, i32, i32) {
    %c0_i32 = arith.constant 0 : i32
    %c0_i32_0 = arith.constant 0 : i32
    %c0_i32_1 = arith.constant 0 : i32
    %c0_i32_2 = arith.constant 0 : i32
    return %c0_i32, %c0_i32_0, %c0_i32_1 : i32, i32, i32
  }
  func.func @transform_5(%arg0: i32) -> (i32, i32) {
    %c0_i32 = arith.constant 0 : i32
    %c0_i32_0 = arith.constant 0 : i32
    %c0_i32_1 = arith.constant 0 : i32
    return %c0_i32, %c0_i32_0 : i32, i32
  }
  func.func @transform_6(%arg0: i32) -> (i32, i32, i32) {
    %c0_i32 = arith.constant 0 : i32
    %c0_i32_0 = arith.constant 0 : i32
    %c0_i32_1 = arith.constant 0 : i32
    return %arg0, %c0_i32, %c0_i32_0 : i32, i32, i32
  }
}

</mosaic_0001>

<bundles_post_ra>
// kernel: discriminator_cond_forward.4
= control target key start
LH: loop header
LB: loop body
LE: loop exit
PB: predicated region body
PF: predicated region fallthrough
CT: control target
= control target key end

     0   :  { %s713_s12 = smov 0   ;;  %s715_s13 = smov 0   ;;  %s809_s0 = inlined_call_operand.vmem [shape: bf16[2,36,1024], index: 0, kind: input, shape index: {}]   ;;  %s810_s1 = inlined_call_operand.vmem [shape: bf16[8,36], index: 1, kind: input, shape index: {}]   ;;  %s811_s2 = inlined_call_operand.vmem [shape: f32[8,1], index: 2, kind: input, shape index: {}]   ;;  %s812_s3 = inlined_call_operand.vmem [shape: bf16[2,8,1024], index: 3, kind: output, shape index: {}]  }
   0x1   :  { %s717_s14 = smov 0   ;;  %s719_s15 = smov 0  }
   0x2   :  { %s721_s16 = smov 0   ;;  %s723_s17 = smov 0  }
   0x3   :  { %s725_s18 = smov 0  }
   0x4 LB: > { %s22_s19 = sadd.s32 1, %s682_s16  ;;  %s25_s20 = sadd.s32 1, %s686_s17  ;;  %s690_s18 = sphi %s725_s18, %s13_s18   ;;  %s686_s17 = sphi %s723_s17, %s818_s17   ;;  %s682_s16 = sphi %s721_s16, %s817_s16   ;;  %s678_s15 = sphi %s719_s15, %s816_s15   ;;  %s674_s14 = sphi %s717_s14, %s815_s14   ;;  %s670_s13 = sphi %s715_s13, %s814_s13   ;;  %s666_s12 = sphi %s713_s12, %s813_s12  }
   0x5   : > { %p23_p0 = scmp.ge.s32.totalorder %s22_s19, 2  ;;  %p41_p1 = scmp.ne.s32.totalorder %s670_s13, %s666_s12 }
   0x6   : > { %p42_p2 = scmp.eq.s32.totalorder %s690_s18, 0  ;;  %s34_s24 = sadd.s32 1, %s670_s13 }
   0x7   : > { %s820_s19 = smov (%p23_p0, %s22_s19), 0  ;;  %s822_s20 = smov (!%p23_p0, %s25_s20), %s686_s17 }
   0x8   : > { %p43_p3 = por %p42_p2, %p41_p1  ;;  %p27_p4 = scmp.ge.s32.totalorder %s822_s20, 2 }
   0x9   : > { %s30_s21 = ssub.s32 %s682_s16, %s820_s19  ;;  %p530_p6 = scmp.ge.s32.totalorder %s690_s18, 4 }
   0xa   : > { %s824_s20 = smov (%p27_p4, %s822_s20), 0 }
   0xb   : > { %s29_s22 = ssub.s32 %s686_s17, %s824_s20  ;;  %143 = sbr.rel (%p530_p6) target bundleno = 29 (0x1d), region = 24 }
   0xc   : > { %s31_s23 = sor.u32 %s30_s21, %s29_s22 }
   0xd   : > { %p32_p5 = scmp.eq.s32.totalorder %s31_s23, 0 }
   0xf   : > { %s764_s25 = scalar_select %p32_p5, %s670_s13, %s34_s24  }
  0x10   : > { %146 = sbr.rel (!%p43_p3) target bundleno = 29 (0x1d), region = 28  ;;  %s148_s26 = sand.u32 (%p43_p3), 1, %s670_s13  }
  0x11   : > { %s559_s27 = smul.u32 (%p43_p3), 80, %s148_s26  ;;  %s531_s28 = sshll.u32 (%p43_p3), %s682_s16, 2 }
  0x12   : > { %s560_s29 = smul.u32 (%p43_p3), 40, %s686_s17 }
  0x13   : > { %s150_s8 = scalar_lea.vmem (%p43_p3), [#allocation2], %s559_s27 }
  0x14   : > { %s153_s30 = sadd.s32 (%p43_p3), %s560_s29, %s531_s28 }
  0x15   : > { %s532_s4 = sshll.u32 %s153_s30, 2 }
  0x16   : > { %s155_s7 = scalar_lea.vmem %s809_s0, %s532_s4 }
  0x17   : > { %v168_v0 = vld [vmem:[%s155_s7] sm:$0xff]  ;;  %v170_v1 = vld [vmem:[%s155_s7 + $0x8] sm:$0xff] }
  0x18   : > { %v172_v2 = vld [vmem:[%s155_s7 + $0x20] sm:$0xff]  ;;  %169 = vst [vmem:[%s150_s8] sm:$0xff] %v168_v0  ;;  %171 = vst [vmem:[%s150_s8 + $0x8] sm:$0xff] %v170_v1  ;;  %v174_v3 = vld [vmem:[%s155_s7 + $0x28] sm:$0xff] }
  0x19   : > { %173 = vst [vmem:[%s150_s8 + $0x10] sm:$0xff] %v172_v2  ;;  %v176_v4 = vld [vmem:[%s155_s7 + $0x40] sm:$0xff]  ;;  %v178_v5 = vld [vmem:[%s155_s7 + $0x48] sm:$0xff]  ;;  %175 = vst [vmem:[%s150_s8 + $0x18] sm:$0xff] %v174_v3 }
  0x1a   : > { %177 = vst [vmem:[%s150_s8 + $0x20] sm:$0xff] %v176_v4  ;;  %179 = vst [vmem:[%s150_s8 + $0x28] sm:$0xff] %v178_v5  ;;  %v180_v6 = vld [vmem:[%s155_s7 + $0x60] sm:$0xff]  ;;  %v182_v7 = vld [vmem:[%s155_s7 + $0x68] sm:$0xff] }
  0x1b   : > { %v184_v8 = vld [vmem:[%s155_s7 + $0x80] sm:$0xff]  ;;  %181 = vst [vmem:[%s150_s8 + $0x30] sm:$0xff] %v180_v6  ;;  %183 = vst [vmem:[%s150_s8 + $0x38] sm:$0xff] %v182_v7  ;;  %v186_v9 = vld [vmem:[%s155_s7 + $0x88] sm:$0xff] }
  0x1c   : > { %185 = vst [vmem:[%s150_s8 + $0x40] sm:$0xff] %v184_v8  ;;  %187 = vst [vmem:[%s150_s8 + $0x48] sm:$0xff] %v186_v9 }
  0x1d PF: > { %p533_p7 = scmp.ge.s32.totalorder %s690_s18, 1  ;;  %p192_p8 = scmp.lt.s32.totalorder %s690_s18, 5 }
  0x1f   : > { %p193_p9 = pnand %p533_p7, %p192_p8 }
  0x20   : > { %s199_s9 = sand.u32 (!%p193_p9), 1, %s666_s12   ;;  %s534_s24 = sshll.u32 (!%p193_p9), %s674_s14, 2 }
  0x21   : > { %196 = sbr.rel (%p193_p9) target bundleno = 257 (0x101), region = 51  ;;  %p228_p10 = scmp.lt.s32.totalorder (!%p193_p9), %s678_s15, 1 }
  0x22   : > { %s561_s10 = smul.u32 (!%p193_p9), 80, %s199_s9  ;;  %p230_p11 = scmp.lt.s32.totalorder (!%p193_p9), %s534_s24, 7 }
  0x24   : > { %s201_s22 = scalar_lea.vmem (!%p193_p9), [#allocation2], %s561_s10 }
  0x26   : > { %v692_v10 = vmov 0   ;;  %v249_v11 = vld [vmem:[%s811_s2] sm:$0xff]  ;;  %vm309_vm0 = vcmask 1041408   ;;  %v248_v13 = vld [vmem:[%s201_s22 + $0x48] sm:$0x33]  ;;  %vm305_vm1 = vcmask 293888  }
  0x27   : > { %354 = vmatprep.mubr.bf16.mxu0 %v692_v10  ;;  %395 = vmatprep.mubr.bf16.mxu1 %v692_v10  ;;  %v247_v12 = vld [vmem:[%s201_s22 + $0x40] sm:$0x33]  ;;  %v548_v15 = vcombine.high %v248_v13, %v248_v13  ;;  %v547_v17 = vcombine.low %v248_v13, %v248_v13  ;;  %v626_v19 = vld [vmem:[%s201_s22 + $0x2c] ss:$16 sps:$4 sm:$0xff]   ;;  %v629_v23 = vld [vmem:[%s201_s22 + $0x28] ss:$16 sps:$4 sm:$0xff]  }
  0x28   : > { %619 = vset.pattern.permute.xlu0 %v692_v10  ;;  %v546_v14 = vcombine.high %v247_v12, %v247_v12  ;;  %v545_v16 = vcombine.low %v247_v12, %v247_v12  ;;  %v624_v18 = vld [vmem:[%s201_s22 + $0x24] ss:$16 sps:$4 sm:$0xff]   ;;  %v628_v22 = vld [vmem:[%s201_s22 + $0x20] ss:$16 sps:$4 sm:$0xff]   ;;  %v632_v25 = vld [vmem:[%s201_s22 + $0xc] ss:$16 sps:$4 sm:$0xff]  }
  0x29   : > { %252 = vperm.xlu0 %619, %v249_v11   ;;  %551 = vmatprep.subr.msk.bf16.mxu1 %vm309_vm0, %v548_v15  ;;  %v317_v21 = vsel %vm309_vm0, %v547_v17, 0  ;;  %v630_v24 = vld [vmem:[%s201_s22 + $0x4] ss:$16 sps:$4 sm:$0xff]   ;;  %v634_v26 = vld [vmem:[%s201_s22] ss:$16 sps:$4 sm:$0xff]   ;;  %s826_s15 = smov (!%p228_p10, %s678_s15), 1 }
  0x2a   : > { %549 = vmatprep.subr.msk.bf16.mxu0 %vm309_vm0, %v546_v14  ;;  %v311_v20 = vsel %vm309_vm0, %v545_v16, 0  ;;  %374 = vmatpush1.bf16.msra.mxu1 %v317_v21  ;;  %v635_v27 = vld [vmem:[%s201_s22 + $0x8] ss:$16 sps:$4 sm:$0xff]   ;;  %v238_v28 = vld [vmem:[%s810_s1] sm:$0xf]  ;;  %s828_s24 = smov (!%p230_p11, %s534_s24), 7 }
  0x2b   : > { %333 = vmatpush1.bf16.msra.mxu0 %v311_v20  ;;  %375 = vmatprep.subr.bf16.mxu1 %v626_v19  ;;  %s535_s26 = sshll.u32 %s826_s15, 3 }
  0x2c   : > { %334 = vmatprep.subr.bf16.mxu0 %v624_v18  ;;  %s233_s27 = sadd.s32 %s535_s26, %s828_s24 }
  0x2d   : > { %s536_s14 = sshll.u32 %s233_s27, 2 }
  0x2e   : > { %376 = vmatpush1.bf16.msra.mxu1 %v629_v23  ;;  %s235_s29 = scalar_lea.vmem %s812_s3, %s536_s14 }
  0x2f   : > { %335 = vmatpush1.bf16.msra.mxu0 %v628_v22  ;;  %377 = vmatprep.subr.bf16.mxu1 %v632_v25 }
  0x30   : > { %336 = vmatprep.subr.bf16.mxu0 %v630_v24 }
  0x32   : > { %378 = vmatpush1.bf16.msra.mxu1 %v635_v27 }
  0x33   : > { %337 = vmatpush1.bf16.msra.mxu0 %v634_v26 }
  0x35   : > { %552 = vmatmul.mubr.msk.bf16.vlgmr.msra.gmra.mxu1 %vm305_vm1, %v238_v28 }
  0x36   : > { %550 = vmatmul.mubr.msk.bf16.vlgmr.msra.gmra.mxu0 %vm305_vm1, %v238_v28 }
  0xa4   : > { %v253_v29 = vpop.permute.xlu0 %252 }
  0xf5   : > { %v397_v31 = vpop.f32.mrf.mxu1 }
  0xf6   : > { %v356_v30 = vpop.f32.mrf.mxu0  ;;  %v398_v33 = vadd.f32 %v397_v31, %v253_v29 }
  0xf7   : > { %v357_v32 = vadd.f32 %v356_v30, %v253_v29  ;;  %v399_v35 = vpop.f32.mrf.mxu1 }
  0xf8   : > { %v358_v34 = vpop.f32.mrf.mxu0  ;;  %v410_v37 = vmul.f32 0.2, %v398_v33  ;;  %v400_v39 = vadd.f32 %v399_v35, %v253_v29  ;;  %vm406_vm3 = vcmp.ge.f32.partialorder %v398_v33, 0.0 }
  0xf9   : > { %v408_v36 = vmul.f32 0.2, %v357_v32  ;;  %v359_v38 = vadd.f32 %v358_v34, %v253_v29  ;;  %v401_v41 = vpop.f32.mrf.mxu1  ;;  %vm404_vm2 = vcmp.ge.f32.partialorder %v357_v32, 0.0 }
  0xfa   : > { %v360_v40 = vpop.f32.mrf.mxu0  ;;  %vm407_vm5 = vcmp.ge.f32.partialorder %v400_v39, 0.0  ;;  %v411_v43 = vmul.f32 0.2, %v400_v39  ;;  %v414_v47 = vsel %vm406_vm3, %v398_v33, %v410_v37 }
  0xfb   : > { %vm405_vm4 = vcmp.ge.f32.partialorder %v359_v38, 0.0  ;;  %v409_v42 = vmul.f32 0.2, %v359_v38  ;;  %v402_v45 = vpop.f32.mrf.mxu1  ;;  %v412_v46 = vsel %vm404_vm2, %v357_v32, %v408_v36 }
  0xfc   : > { %v361_v44 = vpop.f32.mrf.mxu0  ;;  %v415_v49 = vsel %vm407_vm5, %v400_v39, %v411_v43 }
  0xfd   : > { %v413_v48 = vsel %vm405_vm4, %v359_v38, %v409_v42  ;;  %v558_v51 = vpack.c.bf16 %v415_v49, %v414_v47 }
  0xfe   : > { %v557_v50 = vpack.c.bf16 %v413_v48, %v412_v46 }
  0xff   : > { %433 = vst [vmem:[%s235_s29 + $0x8] sm:$0xff] %v558_v51 }
 0x100   : > { %432 = vst [vmem:[%s235_s29] sm:$0xff] %v557_v50 }
 0x101 PF: > { %s13_s18 = sadd.s32 1, %s690_s18   ;;  %s813_s12 = smov %s670_s13 }
 0x102   : > { %p10_p12 = scmp.ge.s32.totalorder %s13_s18, 6   ;;  %s814_s13 = smov %s764_s25 }
 0x103   : > { %s815_s14 = smov %s682_s16  ;;  %s816_s15 = smov %s686_s17 }
 0x104   : > { %s817_s16 = smov %s820_s19  ;;  %s818_s17 = smov %s824_s20 }
 0x105   :  { %12 = sbr.rel (!%p10_p12) target bundleno = 4 (0x4), region = 90 }

// kernel: discriminator_cond_forward.5
= control target key start
LH: loop header
LB: loop body
LE: loop exit
PB: predicated region body
PF: predicated region fallthrough
CT: control target
= control target key end

     0   :  { %s600_s15 = smov 0   ;;  %s636_s0 = inlined_call_operand.vmem [shape: bf16[2,128,256], index: 0, kind: input, shape index: {}]   ;;  %s637_s1 = inlined_call_operand.vmem [shape: bf16[16,128], index: 1, kind: input, shape index: {}]   ;;  %s638_s2 = inlined_call_operand.vmem [shape: f32[16,1], index: 2, kind: input, shape index: {}]   ;;  %s639_s3 = inlined_call_operand.vmem [shape: f32[16,1], index: 3, kind: input, shape index: {}]   ;;  %s640_s4 = inlined_call_operand.vmem [shape: bf16[2,16,256], index: 4, kind: output, shape index: {}]  }
   0x1 LB: > { %s492_s16 = sadd.s32 4294967295, %s572_s15   ;;  %p496_p0 = scmp.ge.s32.totalorder %s572_s15, 1  ;;  %s572_s15 = sphi %s600_s15, %s14_s15  }
   0x2   : > { %p162_p1 = scmp.lt.s32.totalorder %s572_s15, 3 }
   0x4   : > { %p163_p2 = pnand %p496_p0, %p162_p1 }
   0x5   : > { %p188_p3 = scmp.lt.s32.totalorder (!%p163_p2), %s492_s16, 1 }
   0x6   : > { %166 = sbr.rel (%p163_p2) target bundleno = 562 (0x232), region = 36 }
   0xb   : > { %v574_v0 = vmov 0   ;;  %s642_s16 = smov (!%p188_p3, %s492_s16), 1  ;;  %v561_v17 = vld [vmem:[%s637_s1] sm:$0xff]   ;;  %v380_v18 = vld [vmem:[%s638_s2 + $0x8] sm:$0xff] }
   0xc   : > { %335 = vmatprep.mubr.bf16.mxu0 %v574_v0  ;;  %536 = vset.pattern.permute.xlu1 %v574_v0  ;;  %s522_s17 = sshll.u32 %s642_s16, 7  ;;  %v395_v19 = vld [vmem:[%s639_s3] sm:$0xff]  ;;  %v396_v41 = vld [vmem:[%s639_s3 + $0x8] sm:$0xff]  ;;  %s523_s5 = sshll.u32 %s642_s16, 4 }
   0xd   : > { %535 = vset.pattern.permute.xlu0 %v574_v0  ;;  %s192_s20 = scalar_lea.vmem %s636_s0, %s522_s17  ;;  %388 = vperm.xlu1 %536, %v380_v18   ;;  %v379_v26 = vld [vmem:[%s638_s2] sm:$0xff]  ;;  %s197_s8 = scalar_lea.vmem %s640_s4, %s523_s5 }
   0xe   : > { %v537_v1 = vld [vmem:[%s192_s20 + $0x74] ss:$8 sps:$4 sm:$0xff]   ;;  %v539_v2 = vld [vmem:[%s192_s20 + $0x70] ss:$8 sps:$4 sm:$0xff]   ;;  %v540_v3 = vld [vmem:[%s192_s20 + $0x64] ss:$8 sps:$4 sm:$0xff]  }
   0xf   : > { %303 = vmatprep.subr.bf16.mxu0 %v537_v1  ;;  %v542_v4 = vld [vmem:[%s192_s20 + $0x60] ss:$8 sps:$4 sm:$0xff]   ;;  %v543_v5 = vld [vmem:[%s192_s20 + $0x54] ss:$8 sps:$4 sm:$0xff]   ;;  %v545_v6 = vld [vmem:[%s192_s20 + $0x50] ss:$8 sps:$4 sm:$0xff]  }
  0x10   : > { %304 = vmatpush1.bf16.msra.mxu0 %v539_v2  ;;  %v546_v7 = vld [vmem:[%s192_s20 + $0x44] ss:$8 sps:$4 sm:$0xff]   ;;  %v548_v8 = vld [vmem:[%s192_s20 + $0x40] ss:$8 sps:$4 sm:$0xff]   ;;  %v549_v9 = vld [vmem:[%s192_s20 + $0x34] ss:$8 sps:$4 sm:$0xff]  }
  0x11   : > { %305 = vmatprep.subr.bf16.mxu0 %v540_v3  ;;  %v551_v10 = vld [vmem:[%s192_s20 + $0x30] ss:$8 sps:$4 sm:$0xff]   ;;  %v552_v11 = vld [vmem:[%s192_s20 + $0x24] ss:$8 sps:$4 sm:$0xff]   ;;  %v554_v12 = vld [vmem:[%s192_s20 + $0x20] ss:$8 sps:$4 sm:$0xff]   ;;  %399 = vperm.xlu1 %536, %v395_v19  }
  0x12   : > { %v555_v13 = vld [vmem:[%s192_s20 + $0x14] ss:$8 sps:$4 sm:$0xff]   ;;  %v557_v14 = vld [vmem:[%s192_s20 + $0x10] ss:$8 sps:$4 sm:$0xff]   ;;  %v558_v15 = vld [vmem:[%s192_s20 + $0x4] ss:$8 sps:$4 sm:$0xff]  }
  0x13   : > { %v560_v16 = vld [vmem:[%s192_s20] ss:$8 sps:$4 sm:$0xff]  }
  0x14   : > { %306 = vmatpush1.bf16.msra.mxu0 %v542_v4 }
  0x15   : > { %307 = vmatprep.subr.bf16.mxu0 %v543_v5 }
  0x18   : > { %308 = vmatpush1.bf16.msra.mxu0 %v545_v6 }
  0x19   : > { %309 = vmatprep.subr.bf16.mxu0 %v546_v7 }
  0x1c   : > { %310 = vmatpush1.bf16.msra.mxu0 %v548_v8 }
  0x1d   : > { %311 = vmatprep.subr.bf16.mxu0 %v549_v9 }
  0x20   : > { %312 = vmatpush1.bf16.msra.mxu0 %v551_v10 }
  0x21   : > { %313 = vmatprep.subr.bf16.mxu0 %v552_v11 }
  0x24   : > { %314 = vmatpush1.bf16.msra.mxu0 %v554_v12 }
  0x25   : > { %315 = vmatprep.subr.bf16.mxu0 %v555_v13 }
  0x28   : > { %316 = vmatpush1.bf16.msra.mxu0 %v557_v14 }
  0x29   : > { %317 = vmatprep.subr.bf16.mxu0 %v558_v15 }
  0x2c   : > { %318 = vmatpush1.bf16.msra.mxu0 %v560_v16 }
  0x2f   : > { %336 = vmatmul.mubr.bf16.vlgmr.msra.gmra.mxu0 %v561_v17 }
  0x88   : > { %v389_v42 = vpop.permute.xlu1 %388 }
  0x8c   : > { %v400_v43 = vpop.permute.xlu1 %399 }
  0xef   : > { %v337_v20 = vpop.f32.mrf.mxu0 }
  0xf1   : > { %v339_v21 = vpop.f32.mrf.mxu0 }
  0xf2   : > { %v346_v22 = vadd.f32 %v339_v21, %v337_v20 }
  0xf3   : > { %v341_v23 = vpop.f32.mrf.mxu0 }
  0xf4   : > { %347 = vadd.xlane.f32.xlu0 %v346_v22 }
  0xf5   : > { %v343_v24 = vpop.f32.mrf.mxu0 }
  0xf6   : > { %v349_v25 = vadd.f32 %v343_v24, %v341_v23 }
  0xf8   : > { %350 = vadd.xlane.f32.xlu0 %v349_v25 }
 0x10e   : > { %383 = vperm.xlu0 %535, %v379_v26  }
 0x17d   : > { %v348_v27 = vpop.xlane.xlu0 %347 }
 0x17e   : > { %v353_v28 = vmul.f32 0.00390625, %v348_v27 }
 0x180   : > { %v355_v29 = vsub.f32 %v337_v20, %v353_v28  ;;  %v356_v30 = vsub.f32 %v339_v21, %v353_v28 }
 0x181   : > { %v351_v31 = vpop.xlane.xlu0 %350 }
 0x182   : > { %v354_v32 = vmul.f32 0.00390625, %v351_v31  ;;  %v359_v33 = vmul.f32 %v355_v29, %v355_v29  ;;  %v360_v34 = vmul.f32 %v356_v30, %v356_v30 }
 0x184   : > { %v357_v35 = vsub.f32 %v341_v23, %v354_v32  ;;  %v358_v36 = vsub.f32 %v343_v24, %v354_v32  ;;  %v363_v37 = vadd.f32 %v360_v34, %v359_v33 }
 0x186   : > { %364 = vadd.xlane.f32.xlu1 %v363_v37  ;;  %v361_v38 = vmul.f32 %v357_v35, %v357_v35  ;;  %v362_v39 = vmul.f32 %v358_v36, %v358_v36 }
 0x188   : > { %v366_v40 = vadd.f32 %v362_v39, %v361_v38 }
 0x189   : > { %v384_v51 = vpop.permute.xlu0 %383 }
 0x18a   : > { %367 = vadd.xlane.f32.xlu1 %v366_v40 }
 0x19b   : > { %404 = vperm.xlu1 %536, %v396_v41  }
 0x20f   : > { %v365_v44 = vpop.xlane.xlu1 %364 }
 0x210   : > { %v369_v45 = vmul.f32 0.00390625, %v365_v44 }
 0x212   : > { %v371_v46 = vadd.f32 1e-05, %v369_v45 }
 0x213   : > { %v368_v47 = vpop.xlane.xlu1 %367 }
 0x214   : > { %562 = vrsqrt.f32 %v371_v46  ;;  %v370_v48 = vmul.f32 0.00390625, %v368_v47 }
 0x216   : > { %v372_v49 = vadd.f32 1e-05, %v370_v48 }
 0x217   : > { %v405_v63 = vpop.permute.xlu1 %404 }
 0x218   : > { %564 = vrsqrt.f32 %v372_v49 }
 0x221   : > { %v563_v50 = vpop.eup %562 }
 0x222   : > { %v375_v52 = vmul.f32 %v563_v50, %v355_v29  ;;  %v376_v53 = vmul.f32 %v563_v50, %v356_v30 }
 0x224   : > { %v391_v54 = vmul.f32 %v384_v51, %v375_v52  ;;  %v392_v55 = vmul.f32 %v384_v51, %v376_v53 }
 0x225   : > { %v565_v56 = vpop.eup %564 }
 0x226   : > { %v377_v57 = vmul.f32 %v565_v56, %v357_v35  ;;  %v378_v58 = vmul.f32 %v565_v56, %v358_v36  ;;  %v407_v59 = vadd.f32 %v400_v43, %v391_v54  ;;  %v408_v60 = vadd.f32 %v400_v43, %v392_v55 }
 0x228   : > { %v393_v61 = vmul.f32 %v389_v42, %v377_v57  ;;  %v394_v62 = vmul.f32 %v389_v42, %v378_v58  ;;  %vm411_vm0 = vcmp.ge.f32.partialorder %v407_v59, 0.0  ;;  %vm412_vm1 = vcmp.ge.f32.partialorder %v408_v60, 0.0 }
 0x229   : > { %v415_v0 = vmul.f32 0.2, %v407_v59  ;;  %v416_v1 = vmul.f32 0.2, %v408_v60 }
 0x22a   : > { %v409_v2 = vadd.f32 %v405_v63, %v393_v61  ;;  %v410_v3 = vadd.f32 %v405_v63, %v394_v62 }
 0x22b   : > { %v419_v4 = vsel %vm411_vm0, %v407_v59, %v415_v0  ;;  %v420_v5 = vsel %vm412_vm1, %v408_v60, %v416_v1 }
 0x22c   : > { %vm413_vm2 = vcmp.ge.f32.partialorder %v409_v2, 0.0  ;;  %vm414_vm3 = vcmp.ge.f32.partialorder %v410_v3, 0.0  ;;  %v417_v6 = vmul.f32 0.2, %v409_v2  ;;  %v418_v7 = vmul.f32 0.2, %v410_v3 }
 0x22d   : > { %v524_v8 = vpack.c.bf16 %v420_v5, %v419_v4 }
 0x22e   : > { %v421_v9 = vsel %vm413_vm2, %v409_v2, %v417_v6  ;;  %v422_v10 = vsel %vm414_vm3, %v410_v3, %v418_v7 }
 0x22f   : > { %v525_v11 = vpack.c.bf16 %v422_v10, %v421_v9  ;;  %435 = vst [vmem:[%s197_s8] sm:$0xff] %v524_v8 }
 0x231   : > { %436 = vst [vmem:[%s197_s8 + $0x8] sm:$0xff] %v525_v11 }
 0x232 PF: > { %s14_s15 = sadd.s32 1, %s572_s15  }
 0x233   : > { %p11_p4 = scmp.ge.s32.totalorder %s14_s15, 4  }
 0x235   :  { %13 = sbr.rel (!%p11_p4) target bundleno = 1 (0x1), region = 66 }

// kernel: discriminator_cond_forward.6
= control target key start
LH: loop header
LB: loop body
LE: loop exit
PB: predicated region body
PF: predicated region fallthrough
CT: control target
= control target key end

     0   :  { %s758_s15 = smov 0   ;;  %s845_s0 = inlined_call_operand.vmem [shape: bf16[2,256,64], index: 0, kind: input, shape index: {}]   ;;  %s846_s1 = inlined_call_operand.vmem [shape: bf16[32,256], index: 1, kind: input, shape index: {}]   ;;  %s847_s2 = inlined_call_operand.vmem [shape: f32[32,1], index: 2, kind: input, shape index: {}]   ;;  %s848_s3 = inlined_call_operand.vmem [shape: f32[32,1], index: 3, kind: input, shape index: {}]   ;;  %s849_s4 = inlined_call_operand.vmem [shape: bf16[2,32,64], index: 4, kind: output, shape index: {}]  }
   0x1 LB: > { %s598_s16 = sadd.s32 4294967295, %s730_s15   ;;  %p602_p0 = scmp.ge.s32.totalorder %s730_s15, 1  ;;  %s730_s15 = sphi %s758_s15, %s14_s15  }
   0x2   : > { %p162_p1 = scmp.lt.s32.totalorder %s730_s15, 3 }
   0x4   : > { %p163_p2 = pnand %p602_p0, %p162_p1 }
   0x5   : > { %p188_p3 = scmp.lt.s32.totalorder (!%p163_p2), %s598_s16, 1 }
   0x6   : > { %166 = sbr.rel (%p163_p2) target bundleno = 566 (0x236), region = 36 }
   0xb   : > { %v712_v0 = vld [vmem:[%s846_s1 + $0x4] ss:$8 sps:$4 sm:$0xff]   ;;  %s851_s16 = smov (!%p188_p3, %s598_s16), 1  ;;  %v715_v1 = vld [vmem:[%s846_s1 + $0x14] ss:$8 sps:$4 sm:$0xff]   ;;  %v732_v20 = vmov 0  }
   0xc   : > { %383 = vmatprep.mubr.bf16.mxu0 %v712_v0  ;;  %s633_s21 = sshll.u32 %s851_s16, 7  ;;  %391 = vmatprep.mubr.bf16.mxu1 %v715_v1  ;;  %v710_v18 = vld [vmem:[%s846_s1] ss:$8 sps:$4 sm:$0xff]   ;;  %v713_v19 = vld [vmem:[%s846_s1 + $0x10] ss:$8 sps:$4 sm:$0xff]   ;;  %vm400_vm0 = vcmask 523264  }
   0xd   : > { %s778_s24 = scalar_lea.vmem %s845_s0, %s633_s21  ;;  %693 = vset.pattern.permute.xlu1 %v732_v20  ;;  %692 = vset.pattern.permute.xlu0 %v732_v20  ;;  %v455_v37 = vld [vmem:[%s847_s2 + $0x8] sm:$0xff]  ;;  %v456_v38 = vld [vmem:[%s847_s2 + $0x10] sm:$0xff]  ;;  %v457_v39 = vld [vmem:[%s847_s2 + $0x18] sm:$0xff]  ;;  %s634_s21 = sshll.u32 %s851_s16, 4  ;;  %vm538_vm2 = vcmask 519168  }
   0xe   : > { %v694_v2 = vld [vmem:[%s778_s24 + $0x78] sm:$0xff]   ;;  %v696_v4 = vld [vmem:[%s778_s24 + $0x70] sm:$0xff]   ;;  %v698_v6 = vld [vmem:[%s778_s24 + $0x68] sm:$0xff]  }
   0xf   : > { %v695_v3 = vld [vmem:[%s778_s24 + $0x38] sm:$0xff]   ;;  %639 = vmatprep.subr.bf16.mxu0 %v694_v2  ;;  %667 = vmatprep.subr.bf16.mxu1 %v694_v2  ;;  %v697_v5 = vld [vmem:[%s778_s24 + $0x30] sm:$0xff]   ;;  %v699_v7 = vld [vmem:[%s778_s24 + $0x28] sm:$0xff]  }
  0x10   : > { %640 = vmatpush3.bf16.msra.mxu0 %v695_v3  ;;  %675 = vmatpush3.bf16.msra.mxu1 %v695_v3  ;;  %v700_v8 = vld [vmem:[%s778_s24 + $0x60] sm:$0xff]   ;;  %v702_v10 = vld [vmem:[%s778_s24 + $0x58] sm:$0xff]   ;;  %v704_v12 = vld [vmem:[%s778_s24 + $0x50] sm:$0xff]  }
  0x11   : > { %641 = vmatprep.subr.bf16.mxu0 %v696_v4  ;;  %668 = vmatprep.subr.bf16.mxu1 %v696_v4  ;;  %v701_v9 = vld [vmem:[%s778_s24 + $0x20] sm:$0xff]   ;;  %v703_v11 = vld [vmem:[%s778_s24 + $0x18] sm:$0xff]   ;;  %v705_v13 = vld [vmem:[%s778_s24 + $0x10] sm:$0xff]  }
  0x12   : > { %v706_v14 = vld [vmem:[%s778_s24 + $0x48] sm:$0xff]   ;;  %v708_v16 = vld [vmem:[%s778_s24 + $0x40] sm:$0xff]   ;;  %v484_v42 = vld [vmem:[%s848_s3 + $0x10] sm:$0xff] }
  0x13   : > { %v707_v15 = vld [vmem:[%s778_s24 + $0x8] sm:$0xff]   ;;  %v709_v17 = vld [vmem:[%s778_s24] sm:$0xff]   ;;  %v485_v63 = vld [vmem:[%s848_s3 + $0x18] sm:$0xff]  ;;  %s197_s24 = scalar_lea.vmem %s849_s4, %s634_s21 }
  0x14   : > { %642 = vmatpush3.bf16.msra.mxu0 %v697_v5  ;;  %676 = vmatpush3.bf16.msra.mxu1 %v697_v5  ;;  %v482_v40 = vld [vmem:[%s848_s3] sm:$0xff]  ;;  %v483_v41 = vld [vmem:[%s848_s3 + $0x8] sm:$0xff] }
  0x15   : > { %643 = vmatprep.subr.bf16.mxu0 %v698_v6  ;;  %669 = vmatprep.subr.bf16.mxu1 %v698_v6  ;;  %v454_v0 = vld [vmem:[%s847_s2] sm:$0xff] }
  0x18   : > { %644 = vmatpush3.bf16.msra.mxu0 %v699_v7  ;;  %677 = vmatpush3.bf16.msra.mxu1 %v699_v7 }
  0x19   : > { %645 = vmatprep.subr.bf16.mxu0 %v700_v8  ;;  %670 = vmatprep.subr.bf16.mxu1 %v700_v8 }
  0x1c   : > { %646 = vmatpush3.bf16.msra.mxu0 %v701_v9  ;;  %678 = vmatpush3.bf16.msra.mxu1 %v701_v9 }
  0x1d   : > { %647 = vmatprep.subr.bf16.mxu0 %v702_v10  ;;  %671 = vmatprep.subr.bf16.mxu1 %v702_v10 }
  0x20   : > { %648 = vmatpush3.bf16.msra.mxu0 %v703_v11  ;;  %679 = vmatpush3.bf16.msra.mxu1 %v703_v11 }
  0x21   : > { %649 = vmatprep.subr.bf16.mxu0 %v704_v12  ;;  %672 = vmatprep.subr.bf16.mxu1 %v704_v12 }
  0x24   : > { %650 = vmatpush3.bf16.msra.mxu0 %v705_v13  ;;  %680 = vmatpush3.bf16.msra.mxu1 %v705_v13 }
  0x25   : > { %651 = vmatprep.subr.bf16.mxu0 %v706_v14  ;;  %673 = vmatprep.subr.bf16.mxu1 %v706_v14 }
  0x28   : > { %652 = vmatpush3.bf16.msra.mxu0 %v707_v15  ;;  %681 = vmatpush3.bf16.msra.mxu1 %v707_v15 }
  0x29   : > { %653 = vmatprep.subr.bf16.mxu0 %v708_v16  ;;  %674 = vmatprep.subr.bf16.mxu1 %v708_v16 }
  0x2c   : > { %654 = vmatpush3.bf16.msra.mxu0 %v709_v17  ;;  %682 = vmatpush3.bf16.msra.mxu1 %v709_v17 }
  0x2f   : > { %384 = vmatmul.mubr.bf16.vlgmr.msra.gmra.mxu0 %v710_v18  ;;  %392 = vmatmul.mubr.bf16.vlgmr.msra.gmra.mxu1 %v713_v19 }
  0xef   : > { %v655_v21 = vpop.f32.mrf.mxu0  ;;  %v661_v22 = vpop.f32.mrf.mxu1 }
  0xf1   : > { %v656_v23 = vpop.f32.mrf.mxu0  ;;  %v662_v24 = vpop.f32.mrf.mxu1 }
  0xf2   : > { %v657_v25 = vadd.f32 %v656_v23, %v655_v21  ;;  %v663_v26 = vadd.f32 %v662_v24, %v661_v22 }
  0xf3   : > { %v658_v27 = vpop.f32.mrf.mxu0  ;;  %v664_v28 = vpop.f32.mrf.mxu1 }
  0xf4   : > { %v407_v29 = vsel %vm400_vm0, %v663_v26, 0.0  ;;  %v401_v30 = vsel %vm400_vm0, %v657_v25, 0.0 }
  0xf5   : > { %v665_v31 = vpop.f32.mrf.mxu1  ;;  %408 = vadd.xlane.f32.xlu1 %v407_v29  ;;  %v659_v32 = vpop.f32.mrf.mxu0  ;;  %402 = vadd.xlane.f32.xlu0 %v401_v30 }
  0xf6   : > { %v666_v33 = vadd.f32 %v665_v31, %v664_v28  ;;  %v660_v34 = vadd.f32 %v659_v32, %v658_v27 }
  0xf8   : > { %v410_v35 = vsel %vm400_vm0, %v666_v33, 0.0  ;;  %v404_v36 = vsel %vm400_vm0, %v660_v34, 0.0 }
  0xf9   : > { %411 = vadd.xlane.f32.xlu1 %v410_v35  ;;  %405 = vadd.xlane.f32.xlu0 %v404_v36 }
 0x10a   : > { %465 = vperm.xlu1 %693, %v455_v37  }
 0x10e   : > { %470 = vperm.xlu1 %693, %v456_v38  }
 0x112   : > { %475 = vperm.xlu1 %693, %v457_v39  }
 0x116   : > { %488 = vperm.xlu1 %693, %v482_v40  }
 0x11a   : > { %493 = vperm.xlu1 %693, %v483_v41  }
 0x11e   : > { %498 = vperm.xlu1 %693, %v484_v42  }
 0x17e   : > { %v409_v43 = vpop.xlane.xlu1 %408  ;;  %v403_v44 = vpop.xlane.xlu0 %402 }
 0x17f   : > { %v416_v45 = vmul.f32 0.015625, %v409_v43  ;;  %v414_v46 = vmul.f32 0.015625, %v403_v44 }
 0x181   : > { %v420_v47 = vsub.f32 %v663_v26, %v416_v45  ;;  %v418_v48 = vsub.f32 %v657_v25, %v414_v46 }
 0x182   : > { %v412_v49 = vpop.xlane.xlu1 %411  ;;  %v406_v50 = vpop.xlane.xlu0 %405 }
 0x183   : > { %v417_v51 = vmul.f32 0.015625, %v412_v49  ;;  %v415_v52 = vmul.f32 0.015625, %v406_v50  ;;  %v422_v53 = vmul.f32 %v418_v48, %v418_v48  ;;  %v424_v57 = vmul.f32 %v420_v47, %v420_v47 }
 0x185   : > { %v421_v54 = vsub.f32 %v666_v33, %v417_v51  ;;  %v419_v55 = vsub.f32 %v660_v34, %v415_v52  ;;  %v426_v56 = vsel %vm400_vm0, %v422_v53, 0.0  ;;  %v432_v59 = vsel %vm400_vm0, %v424_v57, 0.0 }
 0x186   : > { %427 = vadd.xlane.f32.xlu0 %v426_v56  ;;  %v466_v1 = vpop.permute.xlu1 %465 }
 0x187   : > { %v423_v58 = vmul.f32 %v419_v55, %v419_v55  ;;  %v425_v61 = vmul.f32 %v421_v54, %v421_v54 }
 0x189   : > { %v429_v60 = vsel %vm400_vm0, %v423_v58, 0.0  ;;  %v435_v62 = vsel %vm400_vm0, %v425_v61, 0.0 }
 0x18a   : > { %433 = vadd.xlane.f32.xlu0 %v432_v59  ;;  %430 = vadd.xlane.f32.xlu1 %v429_v60  ;;  %v471_v2 = vpop.permute.xlu1 %470 }
 0x18e   : > { %436 = vadd.xlane.f32.xlu1 %v435_v62  ;;  %v476_v3 = vpop.permute.xlu1 %475 }
 0x192   : > { %v489_v4 = vpop.permute.xlu1 %488 }
 0x196   : > { %v494_v5 = vpop.permute.xlu1 %493 }
 0x19a   : > { %v499_v6 = vpop.permute.xlu1 %498 }
 0x19f   : > { %503 = vperm.xlu1 %693, %v485_v63  }
 0x1a0   : > { %460 = vperm.xlu0 %692, %v454_v0  }
 0x20f   : > { %v428_v7 = vpop.xlane.xlu0 %427 }
 0x210   : > { %v438_v8 = vmul.f32 0.015625, %v428_v7 }
 0x212   : > { %v442_v9 = vadd.f32 1e-05, %v438_v8 }
 0x213   : > { %v431_v10 = vpop.xlane.xlu1 %430  ;;  %v434_v11 = vpop.xlane.xlu0 %433 }
 0x214   : > { %716 = vrsqrt.f32 %v442_v9  ;;  %v439_v12 = vmul.f32 0.015625, %v431_v10  ;;  %v440_v13 = vmul.f32 0.015625, %v434_v11 }
 0x216   : > { %v443_v14 = vadd.f32 1e-05, %v439_v12  ;;  %v444_v15 = vadd.f32 1e-05, %v440_v13 }
 0x217   : > { %v437_v16 = vpop.xlane.xlu1 %436 }
 0x218   : > { %718 = vrsqrt.f32 %v443_v14  ;;  %v441_v17 = vmul.f32 0.015625, %v437_v16 }
 0x219   : > { %720 = vrsqrt.f32 %v444_v15 }
 0x21a   : > { %v445_v18 = vadd.f32 1e-05, %v441_v17 }
 0x21b   : > { %v461_v20 = vpop.permute.xlu0 %460  ;;  %v504_v40 = vpop.permute.xlu1 %503 }
 0x21c   : > { %722 = vrsqrt.f32 %v445_v18 }
 0x221   : > { %v717_v19 = vpop.eup %716 }
 0x222   : > { %v450_v21 = vmul.f32 %v717_v19, %v418_v48 }
 0x224   : > { %v478_v22 = vmul.f32 %v461_v20, %v450_v21 }
 0x225   : > { %v719_v23 = vpop.eup %718 }
 0x226   : > { %v721_v24 = vpop.eup %720  ;;  %v451_v25 = vmul.f32 %v719_v23, %v419_v55  ;;  %v506_v26 = vadd.f32 %v489_v4, %v478_v22 }
 0x227   : > { %v452_v27 = vmul.f32 %v721_v24, %v420_v47 }
 0x228   : > { %v479_v28 = vmul.f32 %v466_v1, %v451_v25  ;;  %vm510_vm1 = vcmp.ge.f32.partialorder %v506_v26, 0.0  ;;  %v514_v29 = vmul.f32 0.2, %v506_v26 }
 0x229   : > { %v723_v30 = vpop.eup %722  ;;  %v480_v31 = vmul.f32 %v471_v2, %v452_v27 }
 0x22a   : > { %v507_v32 = vadd.f32 %v494_v5, %v479_v28  ;;  %v453_v33 = vmul.f32 %v723_v30, %v421_v54  ;;  %v518_v34 = vsel %vm510_vm1, %v506_v26, %v514_v29 }
 0x22b   : > { %v508_v35 = vadd.f32 %v499_v6, %v480_v31  ;;  %v635_v36 = vpack.c.bf16 %v518_v34, %v518_v34 }
 0x22c   : > { %vm511_vm3 = vcmp.ge.f32.partialorder %v507_v32, 0.0  ;;  %v515_v37 = vmul.f32 0.2, %v507_v32  ;;  %v481_v38 = vmul.f32 %v476_v3, %v453_v33 }
 0x22d   : > { %vm512_vm4 = vcmp.ge.f32.partialorder %v508_v35, 0.0  ;;  %v516_v39 = vmul.f32 0.2, %v508_v35  ;;  %539 = vst.msk [vmem:[%s197_s24] sm:$0xf] %vm538_vm2, %v635_v36 }
 0x22e   : > { %v519_v41 = vsel %vm511_vm3, %v507_v32, %v515_v37  ;;  %v509_v42 = vadd.f32 %v504_v40, %v481_v38 }
 0x22f   : > { %v636_v43 = vpack.c.bf16 %v519_v41, %v519_v41  ;;  %v520_v44 = vsel %vm512_vm4, %v508_v35, %v516_v39 }
 0x230   : > { %vm513_vm5 = vcmp.ge.f32.partialorder %v509_v42, 0.0  ;;  %v517_v45 = vmul.f32 0.2, %v509_v42  ;;  %v637_v46 = vpack.c.bf16 %v520_v44, %v520_v44 }
 0x231   : > { %540 = vst.msk [vmem:[%s197_s24 + $0x4] sm:$0xf] %vm538_vm2, %v636_v43 }
 0x232   : > { %v521_v47 = vsel %vm513_vm5, %v509_v42, %v517_v45  ;;  %541 = vst.msk [vmem:[%s197_s24 + $0x8] sm:$0xf] %vm538_vm2, %v637_v46 }
 0x233   : > { %v638_v48 = vpack.c.bf16 %v521_v47, %v521_v47 }
 0x235   : > { %542 = vst.msk [vmem:[%s197_s24 + $0xc] sm:$0xf] %vm538_vm2, %v638_v48 }
 0x236 PF: > { %s14_s15 = sadd.s32 1, %s730_s15  }
 0x237   : > { %p11_p4 = scmp.ge.s32.totalorder %s14_s15, 4  }
 0x239   :  { %13 = sbr.rel (!%p11_p4) target bundleno = 1 (0x1), region = 66 }

// kernel: discriminator_cond_forward.7
= control target key start
LH: loop header
LB: loop body
LE: loop exit
PB: predicated region body
PF: predicated region fallthrough
CT: control target
= control target key end

     0   :  { %s1516_s21 = smov 0   ;;  %s1907_s0 = inlined_call_operand.vmem [shape: bf16[2,512,16], index: 0, kind: input, shape index: {}]   ;;  %s1908_s1 = inlined_call_operand.vmem [shape: bf16[64,512], index: 1, kind: input, shape index: {}]   ;;  %s1909_s2 = inlined_call_operand.vmem [shape: f32[64,1], index: 2, kind: input, shape index: {}]   ;;  %s1910_s3 = inlined_call_operand.vmem [shape: f32[64,1], index: 3, kind: input, shape index: {}]   ;;  %s1911_s4 = inlined_call_operand.vmem [shape: f32[4,64,16], index: 4, kind: input, shape index: {}]   ;;  %s1912_s5 = inlined_call_operand.vmem [shape: f32[1,4], index: 5, kind: input, shape index: {}]   ;;  %s1913_s6 = inlined_call_operand.vmem [shape: f32[2,1,4], index: 6, kind: output, shape index: {}]  }
   0x1 LB: > { %s1213_s22 = sadd.s32 4294967295, %s1477_s21   ;;  %p1217_p0 = scmp.ge.s32.totalorder %s1477_s21, 1  ;;  %s1477_s21 = sphi %s1516_s21, %s16_s21  }
   0x2   : > { %p212_p1 = scmp.lt.s32.totalorder %s1477_s21, 3 }
   0x4   : > { %p213_p2 = pnand %p1217_p0, %p212_p1 }
   0x5   : > { %p240_p3 = scmp.lt.s32.totalorder (!%p213_p2), %s1213_s22, 1 }
   0x6   : > { %216 = sbr.rel (%p213_p2) target bundleno = 879 (0x36f), region = 44 }
   0xb   : > { %v1433_v0 = vld [vmem:[%s1908_s1 + $0x4] ss:$16 sps:$4 sm:$0xff]   ;;  %s1915_s22 = smov (!%p240_p3, %s1213_s22), 1  ;;  %v1436_v1 = vld [vmem:[%s1908_s1 + $0xc] ss:$16 sps:$4 sm:$0xff]   ;;  %v1479_v48 = vmov 0  }
   0xc   : > { %633 = vmatprep.mubr.bf16.mxu0 %v1433_v0  ;;  %s1298_s27 = sshll.u32 %s1915_s22, 8  ;;  %698 = vmatprep.mubr.bf16.mxu1 %v1436_v1  ;;  %v1431_v32 = vld [vmem:[%s1908_s1] ss:$16 sps:$4 sm:$0xff]   ;;  %v1434_v34 = vld [vmem:[%s1908_s1 + $0x8] ss:$16 sps:$4 sm:$0xff]   ;;  %vm731_vm0 = vcmask 130048   ;;  %s247_s7 = scalar_lea.vmem %s1913_s6, %s1915_s22 }
   0xd   : > { %s1536_s30 = scalar_lea.vmem %s1907_s0, %s1298_s27  ;;  %v1437_v36 = vld [vmem:[%s1908_s1 + $0x24] ss:$16 sps:$4 sm:$0xff]   ;;  %v1439_v37 = vld [vmem:[%s1908_s1 + $0x2c] ss:$16 sps:$4 sm:$0xff]   ;;  %v1441_v38 = vld [vmem:[%s1908_s1 + $0x20] ss:$16 sps:$4 sm:$0xff]   ;;  %1398 = vset.pattern.permute.xlu1 %v1479_v48  ;;  %1397 = vset.pattern.permute.xlu0 %v1479_v48 }
   0xe   : > { %v1399_v2 = vld [vmem:[%s1536_s30 + $0x78] sm:$0xff]   ;;  %v1403_v6 = vld [vmem:[%s1536_s30 + $0x70] sm:$0xff]   ;;  %v1407_v10 = vld [vmem:[%s1536_s30 + $0x68] sm:$0xff]   ;;  %vm1164_vm13 = vcmask 24576  }
   0xf   : > { %v1400_v3 = vld [vmem:[%s1536_s30 + $0xf8] sm:$0xff]   ;;  %1299 = vmatprep.subr.bf16.mxu0 %v1399_v2  ;;  %v1404_v7 = vld [vmem:[%s1536_s30 + $0xf0] sm:$0xff]   ;;  %v1408_v11 = vld [vmem:[%s1536_s30 + $0xe8] sm:$0xff]  }
  0x10   : > { %v1401_v4 = vld [vmem:[%s1536_s30 + $0x38] sm:$0xff]   ;;  %1339 = vmatprep.subr.bf16.mxu1 %v1400_v3  ;;  %v1405_v8 = vld [vmem:[%s1536_s30 + $0x30] sm:$0xff]   ;;  %v1409_v12 = vld [vmem:[%s1536_s30 + $0x28] sm:$0xff]  }
  0x11   : > { %v1402_v5 = vld [vmem:[%s1536_s30 + $0xb8] sm:$0xff]   ;;  %1300 = vmatpush3.bf16.msra.mxu0 %v1401_v4  ;;  %v1406_v9 = vld [vmem:[%s1536_s30 + $0xb0] sm:$0xff]   ;;  %v1410_v13 = vld [vmem:[%s1536_s30 + $0xa8] sm:$0xff]  }
  0x12   : > { %1340 = vmatpush3.bf16.msra.mxu1 %v1402_v5  ;;  %1301 = vmatprep.subr.bf16.mxu0 %v1403_v6  ;;  %v1411_v14 = vld [vmem:[%s1536_s30 + $0x60] sm:$0xff]   ;;  %v1415_v18 = vld [vmem:[%s1536_s30 + $0x58] sm:$0xff]   ;;  %v1419_v22 = vld [vmem:[%s1536_s30 + $0x50] sm:$0xff]  }
  0x13   : > { %1341 = vmatprep.subr.bf16.mxu1 %v1404_v7  ;;  %v1412_v15 = vld [vmem:[%s1536_s30 + $0xe0] sm:$0xff]   ;;  %v1416_v19 = vld [vmem:[%s1536_s30 + $0xd8] sm:$0xff]   ;;  %v1420_v23 = vld [vmem:[%s1536_s30 + $0xd0] sm:$0xff]  }
  0x14   : > { %v1413_v16 = vld [vmem:[%s1536_s30 + $0x20] sm:$0xff]   ;;  %v1417_v20 = vld [vmem:[%s1536_s30 + $0x18] sm:$0xff]   ;;  %v1421_v24 = vld [vmem:[%s1536_s30 + $0x10] sm:$0xff]  }
  0x15   : > { %1302 = vmatpush3.bf16.msra.mxu0 %v1405_v8  ;;  %v1414_v17 = vld [vmem:[%s1536_s30 + $0xa0] sm:$0xff]   ;;  %v1418_v21 = vld [vmem:[%s1536_s30 + $0x98] sm:$0xff]   ;;  %v1422_v25 = vld [vmem:[%s1536_s30 + $0x90] sm:$0xff]  }
  0x16   : > { %1342 = vmatpush3.bf16.msra.mxu1 %v1406_v9  ;;  %1303 = vmatprep.subr.bf16.mxu0 %v1407_v10  ;;  %v1423_v26 = vld [vmem:[%s1536_s30 + $0x48] sm:$0xff]   ;;  %v1427_v30 = vld [vmem:[%s1536_s30 + $0x40] sm:$0xff]   ;;  %v843_v48 = vld [vmem:[%s1909_s2 + $0x30] sm:$0xff] }
  0x17   : > { %1343 = vmatprep.subr.bf16.mxu1 %v1408_v11  ;;  %v1424_v27 = vld [vmem:[%s1536_s30 + $0xc8] sm:$0xff]   ;;  %v1428_v31 = vld [vmem:[%s1536_s30 + $0xc0] sm:$0xff]  }
  0x18   : > { %v1425_v28 = vld [vmem:[%s1536_s30 + $0x8] sm:$0xff]   ;;  %v1429_v33 = vld [vmem:[%s1536_s30] sm:$0xff]  }
  0x19   : > { %1304 = vmatpush3.bf16.msra.mxu0 %v1409_v12  ;;  %v1426_v29 = vld [vmem:[%s1536_s30 + $0x88] sm:$0xff]   ;;  %v1430_v35 = vld [vmem:[%s1536_s30 + $0x80] sm:$0xff]  }
  0x1a   : > { %1344 = vmatpush3.bf16.msra.mxu1 %v1410_v13  ;;  %1305 = vmatprep.subr.bf16.mxu0 %v1411_v14  ;;  %v1442_v39 = vld [vmem:[%s1908_s1 + $0x28] ss:$16 sps:$4 sm:$0xff]   ;;  %v1443_v40 = vld [vmem:[%s1908_s1 + $0x44] ss:$16 sps:$4 sm:$0xff]   ;;  %v1445_v41 = vld [vmem:[%s1908_s1 + $0x4c] ss:$16 sps:$4 sm:$0xff]  }
  0x1b   : > { %1345 = vmatprep.subr.bf16.mxu1 %v1412_v15  ;;  %v1447_v42 = vld [vmem:[%s1908_s1 + $0x40] ss:$16 sps:$4 sm:$0xff]   ;;  %v1448_v43 = vld [vmem:[%s1908_s1 + $0x48] ss:$16 sps:$4 sm:$0xff]   ;;  %v1449_v44 = vld [vmem:[%s1908_s1 + $0x64] ss:$16 sps:$4 sm:$0xff]  }
  0x1c   : > { %v1451_v45 = vld [vmem:[%s1908_s1 + $0x6c] ss:$16 sps:$4 sm:$0xff]   ;;  %v1453_v46 = vld [vmem:[%s1908_s1 + $0x60] ss:$16 sps:$4 sm:$0xff]   ;;  %v1454_v47 = vld [vmem:[%s1908_s1 + $0x68] ss:$16 sps:$4 sm:$0xff]  }
  0x1d   : > { %1306 = vmatpush3.bf16.msra.mxu0 %v1413_v16 }
  0x1e   : > { %1346 = vmatpush3.bf16.msra.mxu1 %v1414_v17  ;;  %1307 = vmatprep.subr.bf16.mxu0 %v1415_v18 }
  0x1f   : > { %1347 = vmatprep.subr.bf16.mxu1 %v1416_v19 }
  0x21   : > { %1308 = vmatpush3.bf16.msra.mxu0 %v1417_v20 }
  0x22   : > { %1348 = vmatpush3.bf16.msra.mxu1 %v1418_v21  ;;  %1309 = vmatprep.subr.bf16.mxu0 %v1419_v22 }
  0x23   : > { %1349 = vmatprep.subr.bf16.mxu1 %v1420_v23 }
  0x25   : > { %1310 = vmatpush3.bf16.msra.mxu0 %v1421_v24 }
  0x26   : > { %1350 = vmatpush3.bf16.msra.mxu1 %v1422_v25  ;;  %1311 = vmatprep.subr.bf16.mxu0 %v1423_v26 }
  0x27   : > { %1351 = vmatprep.subr.bf16.mxu1 %v1424_v27 }
  0x29   : > { %1312 = vmatpush3.bf16.msra.mxu0 %v1425_v28 }
  0x2a   : > { %1352 = vmatpush3.bf16.msra.mxu1 %v1426_v29  ;;  %1313 = vmatprep.subr.bf16.mxu0 %v1427_v30 }
  0x2b   : > { %1353 = vmatprep.subr.bf16.mxu1 %v1428_v31 }
  0x2d   : > { %1314 = vmatpush3.bf16.msra.mxu0 %v1429_v33 }
  0x2e   : > { %1354 = vmatpush3.bf16.msra.mxu1 %v1430_v35 }
  0x30   : > { %634 = vmatmul.mubr.bf16.vlgmr.msra.gmra.mxu0 %v1431_v32 }
  0x31   : > { %699 = vmatmul.mubr.bf16.vlgmr.msra.gmra.mxu1 %v1434_v34  ;;  %641 = vmatprep.mubr.bf16.mxu0 %v1437_v36 }
  0x32   : > { %706 = vmatprep.mubr.bf16.mxu1 %v1439_v37 }
  0x38   : > { %642 = vmatmul.mubr.bf16.gmra.mxu0 %v1441_v38 }
  0x39   : > { %707 = vmatmul.mubr.bf16.gmra.mxu1 %v1442_v39  ;;  %649 = vmatprep.mubr.bf16.mxu0 %v1443_v40 }
  0x3a   : > { %714 = vmatprep.mubr.bf16.mxu1 %v1445_v41  ;;  %v838_v41 = vld [vmem:[%s1909_s2 + $0x8] sm:$0xff] }
  0x40   : > { %650 = vmatmul.mubr.bf16.gmra.mxu0 %v1447_v42  ;;  %v839_v42 = vld [vmem:[%s1909_s2 + $0x10] sm:$0xff] }
  0x41   : > { %715 = vmatmul.mubr.bf16.gmra.mxu1 %v1448_v43  ;;  %657 = vmatprep.mubr.bf16.mxu0 %v1449_v44  ;;  %v893_v43 = vld [vmem:[%s1910_s3] sm:$0xff] }
  0x42   : > { %722 = vmatprep.mubr.bf16.mxu1 %v1451_v45  ;;  %v837_v44 = vld [vmem:[%s1909_s2] sm:$0xff]  ;;  %v894_v45 = vld [vmem:[%s1910_s3 + $0x8] sm:$0xff] }
  0x48   : > { %658 = vmatmul.mubr.bf16.gmra.mxu0 %v1453_v46  ;;  %v842_v46 = vld [vmem:[%s1909_s2 + $0x28] sm:$0xff] }
  0x49   : > { %723 = vmatmul.mubr.bf16.gmra.mxu1 %v1454_v47  ;;  %v840_v47 = vld [vmem:[%s1909_s2 + $0x18] sm:$0xff] }
  0xf0   : > { %v1315_v49 = vpop.f32.mrf.mxu0 }
  0xf1   : > { %v1355_v50 = vpop.f32.mrf.mxu1 }
  0xf2   : > { %v1316_v51 = vpop.f32.mrf.mxu0 }
  0xf3   : > { %v1317_v52 = vadd.f32 %v1316_v51, %v1315_v49  ;;  %v1356_v53 = vpop.f32.mrf.mxu1  ;;  %v895_v49 = vld [vmem:[%s1910_s3 + $0x10] sm:$0xff]  ;;  %v841_v51 = vld [vmem:[%s1909_s2 + $0x20] sm:$0xff] }
  0xf4   : > { %v1357_v54 = vadd.f32 %v1356_v53, %v1355_v50  ;;  %v1318_v55 = vpop.f32.mrf.mxu0  ;;  %v844_v50 = vld [vmem:[%s1909_s2 + $0x38] sm:$0xff] }
  0xf5   : > { %v1358_v56 = vpop.f32.mrf.mxu1 }
  0xf6   : > { %v1319_v57 = vpop.f32.mrf.mxu0  ;;  %v1612_v58 = vadd.f32 %v1357_v54, %v1317_v52  ;;  %v896_v52 = vld [vmem:[%s1910_s3 + $0x18] sm:$0xff] }
  0xf7   : > { %v1320_v59 = vadd.f32 %v1319_v57, %v1318_v55  ;;  %v1359_v60 = vpop.f32.mrf.mxu1 }
  0xf8   : > { %v1360_v61 = vadd.f32 %v1359_v60, %v1358_v56  ;;  %v1321_v62 = vpop.f32.mrf.mxu0  ;;  %v732_v63 = vsel %vm731_vm0, %v1612_v58, 0.0 }
  0xf9   : > { %v1361_v0 = vpop.f32.mrf.mxu1  ;;  %733 = vadd.xlane.f32.xlu0 %v732_v63  ;;  %v898_v63 = vld [vmem:[%s1910_s3 + $0x28] sm:$0xff] }
  0xfa   : > { %v1322_v1 = vpop.f32.mrf.mxu0  ;;  %v1616_v2 = vadd.f32 %v1360_v61, %v1320_v59 }
  0xfb   : > { %v1323_v3 = vadd.f32 %v1322_v1, %v1321_v62  ;;  %v1362_v4 = vpop.f32.mrf.mxu1  ;;  %v897_v62 = vld [vmem:[%s1910_s3 + $0x20] sm:$0xff] }
  0xfc   : > { %v1363_v5 = vadd.f32 %v1362_v4, %v1361_v0  ;;  %v1324_v6 = vpop.f32.mrf.mxu0  ;;  %v735_v7 = vsel %vm731_vm0, %v1616_v2, 0.0 }
  0xfd   : > { %v1364_v8 = vpop.f32.mrf.mxu1  ;;  %736 = vadd.xlane.f32.xlu0 %v735_v7 }
  0xfe   : > { %v1325_v9 = vpop.f32.mrf.mxu0  ;;  %v1620_v10 = vadd.f32 %v1363_v5, %v1323_v3 }
  0xff   : > { %v1326_v11 = vadd.f32 %v1325_v9, %v1324_v6  ;;  %v1365_v12 = vpop.f32.mrf.mxu1 }
 0x100   : > { %v1366_v13 = vadd.f32 %v1365_v12, %v1364_v8  ;;  %v1327_v14 = vpop.f32.mrf.mxu0  ;;  %v738_v15 = vsel %vm731_vm0, %v1620_v10, 0.0 }
 0x101   : > { %v1367_v16 = vpop.f32.mrf.mxu1  ;;  %739 = vadd.xlane.f32.xlu1 %v738_v15 }
 0x102   : > { %v1328_v17 = vpop.f32.mrf.mxu0  ;;  %v1624_v18 = vadd.f32 %v1366_v13, %v1326_v11 }
 0x103   : > { %v1329_v19 = vadd.f32 %v1328_v17, %v1327_v14  ;;  %v1368_v20 = vpop.f32.mrf.mxu1 }
 0x104   : > { %v1369_v21 = vadd.f32 %v1368_v20, %v1367_v16  ;;  %v1330_v22 = vpop.f32.mrf.mxu0  ;;  %v741_v23 = vsel %vm731_vm0, %v1624_v18, 0.0 }
 0x105   : > { %v1370_v24 = vpop.f32.mrf.mxu1  ;;  %742 = vadd.xlane.f32.xlu1 %v741_v23 }
 0x106   : > { %v1331_v25 = vpop.f32.mrf.mxu0  ;;  %v1628_v26 = vadd.f32 %v1369_v21, %v1329_v19 }
 0x107   : > { %v1332_v27 = vadd.f32 %v1331_v25, %v1330_v22  ;;  %v1371_v28 = vpop.f32.mrf.mxu1 }
 0x108   : > { %v1372_v29 = vadd.f32 %v1371_v28, %v1370_v24  ;;  %v1333_v30 = vpop.f32.mrf.mxu0  ;;  %v744_v31 = vsel %vm731_vm0, %v1628_v26, 0.0 }
 0x109   : > { %v1373_v32 = vpop.f32.mrf.mxu1  ;;  %745 = vadd.xlane.f32.xlu0 %v744_v31 }
 0x10a   : > { %v1334_v33 = vpop.f32.mrf.mxu0  ;;  %v1632_v34 = vadd.f32 %v1372_v29, %v1332_v27 }
 0x10b   : > { %v1335_v35 = vadd.f32 %v1334_v33, %v1333_v30  ;;  %v1374_v36 = vpop.f32.mrf.mxu1 }
 0x10c   : > { %v1375_v37 = vadd.f32 %v1374_v36, %v1373_v32  ;;  %v747_v38 = vsel %vm731_vm0, %v1632_v34, 0.0  ;;  %v1336_v53 = vpop.f32.mrf.mxu0 }
 0x10d   : > { %748 = vadd.xlane.f32.xlu1 %v747_v38  ;;  %v1376_v54 = vpop.f32.mrf.mxu1 }
 0x10e   : > { %v1636_v39 = vadd.f32 %v1375_v37, %v1335_v35  ;;  %v1337_v55 = vpop.f32.mrf.mxu0 }
 0x10f   : > { %v1377_v56 = vpop.f32.mrf.mxu1  ;;  %v1338_v57 = vadd.f32 %v1337_v55, %v1336_v53 }
 0x110   : > { %v750_v40 = vsel %vm731_vm0, %v1636_v39, 0.0  ;;  %v1378_v59 = vadd.f32 %v1377_v56, %v1376_v54 }
 0x111   : > { %751 = vadd.xlane.f32.xlu0 %v750_v40 }
 0x112   : > { %v728_v60 = vadd.f32 %v1378_v59, %v1338_v57 }
 0x114   : > { %v753_v61 = vsel %vm731_vm0, %v728_v60, 0.0 }
 0x11e   : > { %852 = vperm.xlu1 %1398, %v838_v41  }
 0x122   : > { %857 = vperm.xlu1 %1398, %v839_v42  }
 0x126   : > { %903 = vperm.xlu1 %1398, %v893_v43  }
 0x127   : > { %847 = vperm.xlu0 %1397, %v837_v44  }
 0x12a   : > { %908 = vperm.xlu1 %1398, %v894_v45  }
 0x12b   : > { %872 = vperm.xlu0 %1397, %v842_v46  }
 0x12e   : > { %862 = vperm.xlu1 %1398, %v840_v47  }
 0x12f   : > { %877 = vperm.xlu0 %1397, %v843_v48   ;;  %v899_v48 = vld [vmem:[%s1910_s3 + $0x30] sm:$0xff] }
 0x132   : > { %913 = vperm.xlu1 %1398, %v895_v49  }
 0x133   : > { %882 = vperm.xlu0 %1397, %v844_v50  }
 0x136   : > { %867 = vperm.xlu1 %1398, %v841_v51  }
 0x13a   : > { %918 = vperm.xlu1 %1398, %v896_v52  }
 0x15e   : > { %754 = vadd.xlane.f32.xlu1 %v753_v61 }
 0x16f   : > { %923 = vperm.xlu1 %1398, %v897_v62  }
 0x173   : > { %928 = vperm.xlu1 %1398, %v898_v63  }
 0x182   : > { %v734_v0 = vpop.xlane.xlu0 %733 }
 0x183   : > { %v757_v1 = vmul.f32 0.0625, %v734_v0 }
 0x185   : > { %v1684_v3 = vsub.f32 %v1612_v58, %v757_v1 }
 0x186   : > { %v737_v4 = vpop.xlane.xlu0 %736 }
 0x187   : > { %v773_v5 = vmul.f32 %v1684_v3, %v1684_v3  ;;  %v758_v7 = vmul.f32 0.0625, %v737_v4 }
 0x189   : > { %v781_v6 = vsel %vm731_vm0, %v773_v5, 0.0  ;;  %v1693_v12 = vsub.f32 %v1616_v2, %v758_v7 }
 0x18a   : > { %v740_v8 = vpop.xlane.xlu1 %739  ;;  %782 = vadd.xlane.f32.xlu0 %v781_v6 }
 0x18b   : > { %v759_v9 = vmul.f32 0.0625, %v740_v8  ;;  %v774_v19 = vmul.f32 %v1693_v12, %v1693_v12 }
 0x18d   : > { %v1690_v11 = vsub.f32 %v1620_v10, %v759_v9  ;;  %v784_v21 = vsel %vm731_vm0, %v774_v19, 0.0 }
 0x18e   : > { %v743_v13 = vpop.xlane.xlu1 %742 }
 0x18f   : > { %v760_v14 = vmul.f32 0.0625, %v743_v13  ;;  %v775_v58 = vmul.f32 %v1690_v11, %v1690_v11 }
 0x191   : > { %v787_v15 = vsel %vm731_vm0, %v775_v58, 0.0  ;;  %v1699_v16 = vsub.f32 %v1624_v18, %v760_v14 }
 0x192   : > { %788 = vadd.xlane.f32.xlu0 %v787_v15  ;;  %v746_v17 = vpop.xlane.xlu0 %745 }
 0x193   : > { %v761_v10 = vmul.f32 0.0625, %v746_v17  ;;  %v776_v22 = vmul.f32 %v1699_v16, %v1699_v16 }
 0x195   : > { %v1704_v20 = vsub.f32 %v1628_v26, %v761_v10  ;;  %v790_v26 = vsel %vm731_vm0, %v776_v22, 0.0 }
 0x196   : > { %v749_v2 = vpop.xlane.xlu1 %748 }
 0x197   : > { %v762_v23 = vmul.f32 0.0625, %v749_v2  ;;  %785 = vadd.xlane.f32.xlu1 %v784_v21  ;;  %v777_v18 = vmul.f32 %v1704_v20, %v1704_v20 }
 0x199   : > { %v1712_v24 = vsub.f32 %v1632_v34, %v762_v23  ;;  %v793_v25 = vsel %vm731_vm0, %v777_v18, 0.0  ;;  %v900_v34 = vld [vmem:[%s1910_s3 + $0x38] sm:$0xff] }
 0x19a   : > { %794 = vadd.xlane.f32.xlu0 %v793_v25  ;;  %v752_v27 = vpop.xlane.xlu0 %751  ;;  %v853_v35 = vpop.permute.xlu1 %852 }
 0x19b   : > { %v763_v28 = vmul.f32 0.0625, %v752_v27  ;;  %791 = vadd.xlane.f32.xlu1 %v790_v26  ;;  %v778_v29 = vmul.f32 %v1712_v24, %v1712_v24 }
 0x19d   : > { %v1719_v30 = vsub.f32 %v1636_v39, %v763_v28  ;;  %v796_v31 = vsel %vm731_vm0, %v778_v29, 0.0 }
 0x19e   : > { %v858_v36 = vpop.permute.xlu1 %857 }
 0x19f   : > { %797 = vadd.xlane.f32.xlu1 %v796_v31  ;;  %v779_v32 = vmul.f32 %v1719_v30, %v1719_v30 }
 0x1a1   : > { %v799_v33 = vsel %vm731_vm0, %v779_v32, 0.0 }
 0x1a2   : > { %800 = vadd.xlane.f32.xlu0 %v799_v33  ;;  %v904_v37 = vpop.permute.xlu1 %903  ;;  %v848_v49 = vpop.permute.xlu0 %847 }
 0x1a6   : > { %v909_v38 = vpop.permute.xlu1 %908  ;;  %v1742_v50 = vpop.permute.xlu0 %872 }
 0x1aa   : > { %v863_v39 = vpop.permute.xlu1 %862  ;;  %v1744_v51 = vpop.permute.xlu0 %877 }
 0x1ae   : > { %v1728_v40 = vpop.permute.xlu1 %913  ;;  %v1748_v53 = vpop.permute.xlu0 %882 }
 0x1b2   : > { %v1730_v41 = vpop.permute.xlu1 %867 }
 0x1b6   : > { %v1732_v42 = vpop.permute.xlu1 %918 }
 0x1b8   : > { %938 = vperm.xlu0 %1397, %v900_v34  }
 0x1e7   : > { %v755_v43 = vpop.xlane.xlu1 %754 }
 0x1e8   : > { %v764_v44 = vmul.f32 0.0625, %v755_v43 }
 0x1ea   : > { %v1734_v45 = vsub.f32 %v728_v60, %v764_v44 }
 0x1eb   : > { %v1746_v52 = vpop.permute.xlu1 %923 }
 0x1ec   : > { %v780_v46 = vmul.f32 %v1734_v45, %v1734_v45 }
 0x1ee   : > { %v802_v47 = vsel %vm731_vm0, %v780_v46, 0.0 }
 0x1ef   : > { %803 = vadd.xlane.f32.xlu1 %v802_v47  ;;  %v1750_v54 = vpop.permute.xlu1 %928 }
 0x200   : > { %933 = vperm.xlu1 %1398, %v899_v48  }
 0x213   : > { %v783_v56 = vpop.xlane.xlu0 %782 }
 0x214   : > { %v805_v59 = vmul.f32 0.0625, %v783_v56 }
 0x216   : > { %v813_v62 = vadd.f32 1e-05, %v805_v59  ;;  %v1287_v59 = vld [vmem:[%s1911_s4 + $0xc0] sm:$0xff] }
 0x21b   : > { %v789_v60 = vpop.xlane.xlu0 %788 }
 0x21c   : > { %v807_v0 = vmul.f32 0.0625, %v789_v60 }
 0x21e   : > { %v815_v4 = vadd.f32 1e-05, %v807_v0  ;;  %v1271_v0 = vld [vmem:[%s1911_s4 + $0x50] sm:$0xff] }
 0x220   : > { %v786_v55 = vpop.xlane.xlu1 %785 }
 0x221   : > { %v806_v57 = vmul.f32 0.0625, %v786_v55 }
 0x223   : > { %v814_v61 = vadd.f32 1e-05, %v806_v57  ;;  %v795_v5 = vpop.xlane.xlu0 %794 }
 0x224   : > { %v792_v63 = vpop.xlane.xlu1 %791  ;;  %v809_v7 = vmul.f32 0.0625, %v795_v5 }
 0x225   : > { %1455 = vrsqrt.f32 %v814_v61  ;;  %v808_v1 = vmul.f32 0.0625, %v792_v63 }
 0x226   : > { %1457 = vrsqrt.f32 %v813_v62  ;;  %v817_v13 = vadd.f32 1e-05, %v809_v7 }
 0x227   : > { %v816_v6 = vadd.f32 1e-05, %v808_v1  ;;  %1459 = vrsqrt.f32 %v815_v4 }
 0x228   : > { %v798_v8 = vpop.xlane.xlu1 %797 }
 0x229   : > { %1461 = vrsqrt.f32 %v816_v6  ;;  %v810_v9 = vmul.f32 0.0625, %v798_v8  ;;  %v1288_v6 = vld [vmem:[%s1911_s4 + $0xc8] sm:$0xff] }
 0x22a   : > { %1463 = vrsqrt.f32 %v817_v13  ;;  %v1272_v13 = vld [vmem:[%s1911_s4 + $0x58] sm:$0xff] }
 0x22b   : > { %v818_v14 = vadd.f32 1e-05, %v810_v9  ;;  %v801_v58 = vpop.xlane.xlu0 %800 }
 0x22c   : > { %v811_v19 = vmul.f32 0.0625, %v801_v58 }
 0x22d   : > { %1465 = vrsqrt.f32 %v818_v14 }
 0x22e   : > { %v819_v22 = vadd.f32 1e-05, %v811_v19 }
 0x230   : > { %1467 = vrsqrt.f32 %v819_v22 }
 0x232   : > { %v1456_v15 = vpop.eup %1455 }
 0x233   : > { %v1458_v17 = vpop.eup %1457  ;;  %v830_v10 = vmul.f32 %v1456_v15, %v1693_v12 }
 0x234   : > { %v829_v2 = vmul.f32 %v1458_v17, %v1684_v3  ;;  %v1460_v21 = vpop.eup %1459  ;;  %v978_v17 = vld [vmem:[%s1911_s4 + $0x18] sm:$0xff] }
 0x235   : > { %v886_v23 = vmul.f32 %v853_v35, %v830_v10  ;;  %v831_v27 = vmul.f32 %v1460_v21, %v1690_v11 }
 0x236   : > { %v1462_v18 = vpop.eup %1461  ;;  %v885_v25 = vmul.f32 %v848_v49, %v829_v2 }
 0x237   : > { %v942_v26 = vadd.f32 %v909_v38, %v886_v23  ;;  %v832_v28 = vmul.f32 %v1462_v18, %v1699_v16  ;;  %v1464_v31 = vpop.eup %1463  ;;  %v887_v32 = vmul.f32 %v858_v36, %v831_v27  ;;  %v1270_v16 = vld [vmem:[%s1911_s4 + $0x48] sm:$0xff] }
 0x238   : > { %v941_v29 = vadd.f32 %v904_v37, %v885_v25  ;;  %v833_v3 = vmul.f32 %v1464_v31, %v1704_v20  ;;  %v1269_v20 = vld [vmem:[%s1911_s4 + $0x40] sm:$0xff]  ;;  %v1289_v31 = vld [vmem:[%s1911_s4 + $0xd0] sm:$0xff] }
 0x239   : > { %v958_v33 = vmul.f32 0.2, %v942_v26  ;;  %v888_v34 = vmul.f32 %v863_v39, %v832_v28  ;;  %vm950_vm1 = vcmp.ge.f32.partialorder %v942_v26, 0.0  ;;  %v943_v35 = vadd.f32 %v1728_v40, %v887_v32  ;;  %v976_v39 = vld [vmem:[%s1911_s4 + $0x8] sm:$0xff]  ;;  %v1280_v28 = vld [vmem:[%s1911_s4 + $0x90] sm:$0xff] }
 0x23a   : > { %v1466_v12 = vpop.eup %1465  ;;  %v957_v43 = vmul.f32 0.2, %v941_v29  ;;  %vm949_vm2 = vcmp.ge.f32.partialorder %v941_v29, 0.0  ;;  %v889_v36 = vmul.f32 %v1730_v41, %v833_v3  ;;  %v1278_v41 = vld [vmem:[%s1911_s4 + $0x80] sm:$0xff] }
 0x23b   : > { %v944_v44 = vadd.f32 %v1732_v42, %v888_v34  ;;  %v834_v11 = vmul.f32 %v1466_v12, %v1712_v24  ;;  %v966_v38 = vsel %vm950_vm1, %v942_v26, %v958_v33  ;;  %v959_v42 = vmul.f32 0.2, %v943_v35  ;;  %v975_v24 = vld [vmem:[%s1911_s4] sm:$0xff] }
 0x23c   : > { %v965_v37 = vsel %vm949_vm2, %v941_v29, %v957_v43  ;;  %vm951_vm3 = vcmp.ge.f32.partialorder %v943_v35, 0.0  ;;  %v1031_v47 = vmul.f32 %v1270_v16, %v966_v38  ;;  %v984_v57 = vmul.f32 %v976_v39, %v966_v38  ;;  %v979_v43 = vld [vmem:[%s1911_s4 + $0x20] sm:$0xff] }
 0x23d   : > { %v1468_v48 = vpop.eup %1467  ;;  %v890_v49 = vmul.f32 %v1742_v50, %v834_v11  ;;  %v960_v55 = vmul.f32 0.2, %v944_v44  ;;  %v1030_v56 = vmul.f32 %v1269_v20, %v965_v37  ;;  %v945_v61 = vadd.f32 %v1746_v52, %v889_v36  ;;  %v977_v50 = vld [vmem:[%s1911_s4 + $0x10] sm:$0xff]  ;;  %v1279_v52 = vld [vmem:[%s1911_s4 + $0x88] sm:$0xff]  ;;  %v1281_v36 = vld [vmem:[%s1911_s4 + $0x98] sm:$0xff] }
 0x23e   : > { %vm952_vm4 = vcmp.ge.f32.partialorder %v944_v44, 0.0  ;;  %v983_v62 = vmul.f32 %v975_v24, %v965_v37  ;;  %v967_v63 = vsel %vm951_vm3, %v943_v35, %v959_v42  ;;  %v1077_v1 = vmul.f32 %v1278_v41, %v965_v37  ;;  %v1290_v20 = vld [vmem:[%s1911_s4 + $0xd8] sm:$0xff]  ;;  %v1274_v42 = vld [vmem:[%s1911_s4 + $0x68] sm:$0xff] }
 0x23f   : > { %v835_v4 = vmul.f32 %v1468_v48, %v1719_v30  ;;  %v1039_v5 = vsel %vm731_vm0, %v1031_v47, 0.0  ;;  %v1124_v7 = vmul.f32 %v1287_v59, %v965_v37  ;;  %v946_v8 = vadd.f32 %v1750_v54, %v890_v49  ;;  %v980_v48 = vld [vmem:[%s1911_s4 + $0x28] sm:$0xff]  ;;  %v1282_v49 = vld [vmem:[%s1911_s4 + $0xa0] sm:$0xff] }
 0x240   : > { %v968_v9 = vsel %vm952_vm4, %v944_v44, %v960_v55  ;;  %v1038_v30 = vsel %vm731_vm0, %v1030_v56, 0.0  ;;  %v992_v14 = vsel %vm731_vm0, %v984_v57, 0.0  ;;  %v961_v58 = vmul.f32 0.2, %v945_v61 }
 0x241   : > { %v1032_v15 = vmul.f32 %v1271_v0, %v967_v63  ;;  %v985_v19 = vmul.f32 %v977_v50, %v967_v63  ;;  %v991_v10 = vsel %vm731_vm0, %v983_v62, 0.0  ;;  %vm953_vm5 = vcmp.ge.f32.partialorder %v945_v61, 0.0 }
 0x242   : > { %v1040_v54 = vadd.f32 %v1039_v5, %v1038_v30  ;;  %v1078_v21 = vmul.f32 %v1279_v52, %v966_v38  ;;  %v1125_v22 = vmul.f32 %v1288_v6, %v966_v38  ;;  %v891_v23 = vmul.f32 %v1744_v51, %v835_v4  ;;  %v1273_v51 = vld [vmem:[%s1911_s4 + $0x60] sm:$0xff]  ;;  %v981_v30 = vld [vmem:[%s1911_s4 + $0x30] sm:$0xff] }
 0x243   : > { %v1033_v18 = vmul.f32 %v1272_v13, %v968_v9  ;;  %v993_v25 = vadd.f32 %v992_v14, %v991_v10  ;;  %v962_v27 = vmul.f32 0.2, %v946_v8  ;;  %v986_v26 = vmul.f32 %v978_v17, %v968_v9  ;;  %v1275_v13 = vld [vmem:[%s1911_s4 + $0x70] sm:$0xff] }
 0x244   : > { %v1085_v29 = vsel %vm731_vm0, %v1077_v1, 0.0  ;;  %v1132_v32 = vsel %vm731_vm0, %v1124_v7, 0.0  ;;  %vm954_vm6 = vcmp.ge.f32.partialorder %v946_v8, 0.0  ;;  %v969_v34 = vsel %vm953_vm5, %v945_v61, %v961_v58  ;;  %v1291_v7 = vld [vmem:[%s1911_s4 + $0xe0] sm:$0xff] }
 0x245   : > { %v1041_v12 = vsel %vm731_vm0, %v1032_v15, 0.0  ;;  %v994_v35 = vsel %vm731_vm0, %v985_v19, 0.0  ;;  %v1086_v44 = vsel %vm731_vm0, %v1078_v21, 0.0  ;;  %v1133_v11 = vsel %vm731_vm0, %v1125_v22, 0.0 }
 0x246   : > { %v1042_v3 = vadd.f32 %v1041_v12, %v1040_v54  ;;  %v1043_v38 = vsel %vm731_vm0, %v1033_v18, 0.0  ;;  %v995_v16 = vadd.f32 %v994_v35, %v993_v25  ;;  %v1079_v37 = vmul.f32 %v1280_v28, %v967_v63  ;;  %v1284_v28 = vld [vmem:[%s1911_s4 + $0xb0] sm:$0xff] }
 0x247   : > { %v1126_v39 = vmul.f32 %v1289_v31, %v967_v63  ;;  %v1034_v24 = vmul.f32 %v1273_v51, %v969_v34  ;;  %v996_v47 = vsel %vm731_vm0, %v986_v26, 0.0  ;;  %v1087_v55 = vadd.f32 %v1086_v44, %v1085_v29  ;;  %v1283_v63 = vld [vmem:[%s1911_s4 + $0xa8] sm:$0xff]  ;;  %v1293_v31 = vld [vmem:[%s1911_s4 + $0xf0] sm:$0xff]  ;;  %v982_v51 = vld [vmem:[%s1911_s4 + $0x38] sm:$0xff] }
 0x248   : > { %v1134_v56 = vadd.f32 %v1133_v11, %v1132_v32  ;;  %v1044_v57 = vadd.f32 %v1043_v38, %v1042_v3  ;;  %v1080_v59 = vmul.f32 %v1281_v36, %v968_v9  ;;  %v997_v62 = vadd.f32 %v996_v47, %v995_v16  ;;  %v1285_v44 = vld [vmem:[%s1911_s4 + $0xb8] sm:$0xff] }
 0x249   : > { %v1088_v0 = vsel %vm731_vm0, %v1079_v37, 0.0  ;;  %v1135_v50 = vsel %vm731_vm0, %v1126_v39, 0.0  ;;  %v1045_v4 = vsel %vm731_vm0, %v1034_v24, 0.0  ;;  %v1081_v6 = vmul.f32 %v1282_v49, %v969_v34  ;;  %v1294_v11 = vld [vmem:[%s1911_s4 + $0xf8] sm:$0xff] }
 0x24a   : > { %v1089_v14 = vadd.f32 %v1088_v0, %v1087_v55  ;;  %v1136_v58 = vadd.f32 %v1135_v50, %v1134_v56  ;;  %v1046_v15 = vadd.f32 %v1045_v4, %v1044_v57  ;;  %v1090_v19 = vsel %vm731_vm0, %v1080_v59, 0.0 }
 0x24b   : > { %v1128_v22 = vmul.f32 %v1291_v7, %v969_v34  ;;  %v1092_v12 = vsel %vm731_vm0, %v1081_v6, 0.0 }
 0x24c   : > { %v1091_v29 = vadd.f32 %v1090_v19, %v1089_v14 }
 0x24d   : > { %v1139_v38 = vsel %vm731_vm0, %v1128_v22, 0.0 }
 0x278   : > { %v804_v40 = vpop.xlane.xlu1 %803 }
 0x279   : > { %v812_v46 = vmul.f32 0.0625, %v804_v40  ;;  %v970_v40 = vsel %vm954_vm6, %v946_v8, %v962_v27 }
 0x27a   : > { %v1035_v61 = vmul.f32 %v1274_v42, %v970_v40  ;;  %v988_v5 = vmul.f32 %v980_v48, %v970_v40  ;;  %v1082_v17 = vmul.f32 %v1283_v63, %v970_v40 }
 0x27b   : > { %v820_v60 = vadd.f32 1e-05, %v812_v46  ;;  %v987_v46 = vmul.f32 %v979_v43, %v969_v34 }
 0x27c   : > { %v934_v2 = vpop.permute.xlu1 %933  ;;  %v1047_v54 = vsel %vm731_vm0, %v1035_v61, 0.0  ;;  %v1000_v27 = vsel %vm731_vm0, %v988_v5, 0.0  ;;  %v1094_v43 = vsel %vm731_vm0, %v1082_v17, 0.0 }
 0x27d   : > { %1469 = vrsqrt.f32 %v820_v60  ;;  %v947_v33 = vadd.f32 %v934_v2, %v891_v23  ;;  %v1127_v60 = vmul.f32 %v1290_v20, %v968_v9  ;;  %v998_v52 = vsel %vm731_vm0, %v987_v46, 0.0  ;;  %v939_v23 = vpop.permute.xlu0 %938 }
 0x27e   : > { %v999_v21 = vadd.f32 %v998_v52, %v997_v62  ;;  %v1048_v34 = vadd.f32 %v1047_v54, %v1046_v15 }
 0x27f   : > { %v963_v41 = vmul.f32 0.2, %v947_v33  ;;  %vm955_vm7 = vcmp.ge.f32.partialorder %v947_v33, 0.0  ;;  %v1137_v10 = vsel %vm731_vm0, %v1127_v60, 0.0 }
 0x280   : > { %v1138_v32 = vadd.f32 %v1137_v10, %v1136_v58  ;;  %v1001_v35 = vadd.f32 %v1000_v27, %v999_v21 }
 0x281   : > { %v971_v9 = vsel %vm955_vm7, %v947_v33, %v963_v41  ;;  %v1276_v33 = vld [vmem:[%s1911_s4 + $0x78] sm:$0xff] }
 0x282   : > { %v1036_v18 = vmul.f32 %v1275_v13, %v971_v9  ;;  %v989_v25 = vmul.f32 %v981_v30, %v971_v9  ;;  %v1083_v37 = vmul.f32 %v1284_v28, %v971_v9  ;;  %v1130_v20 = vmul.f32 %v1293_v31, %v971_v9 }
 0x283   : > { %v1140_v42 = vadd.f32 %v1139_v38, %v1138_v32 }
 0x284   : > { %v1049_v16 = vsel %vm731_vm0, %v1036_v18, 0.0  ;;  %v1002_v36 = vsel %vm731_vm0, %v989_v25, 0.0  ;;  %v1096_v59 = vsel %vm731_vm0, %v1083_v37, 0.0  ;;  %v1143_v60 = vsel %vm731_vm0, %v1130_v20, 0.0 }
 0x285   : > { %v1050_v49 = vadd.f32 %v1049_v16, %v1048_v34  ;;  %v1003_v55 = vadd.f32 %v1002_v36, %v1001_v35 }
 0x28a   : > { %v1470_v1 = vpop.eup %1469 }
 0x28b   : > { %v836_v8 = vmul.f32 %v1470_v1, %v1734_v45  ;;  %v1292_v45 = vld [vmem:[%s1911_s4 + $0xe8] sm:$0xff] }
 0x28d   : > { %v892_v2 = vmul.f32 %v1748_v53, %v836_v8  ;;  %v1129_v53 = vmul.f32 %v1292_v45, %v970_v40  ;;  %v1093_v40 = vadd.f32 %v1092_v12, %v1091_v29 }
 0x28f   : > { %v948_v26 = vadd.f32 %v939_v23, %v892_v2  ;;  %v1141_v24 = vsel %vm731_vm0, %v1129_v53, 0.0  ;;  %v1095_v63 = vadd.f32 %v1094_v43, %v1093_v40  ;;  %v1480_v43 = vmov 0.0  }
 0x290   : > { %v1142_v0 = vadd.f32 %v1141_v24, %v1140_v42 }
 0x291   : > { %vm956_vm8 = vcmp.ge.f32.partialorder %v948_v26, 0.0  ;;  %v964_v3 = vmul.f32 0.2, %v948_v26  ;;  %v1097_v4 = vadd.f32 %v1096_v59, %v1095_v63 }
 0x292   : > { %v1144_v5 = vadd.f32 %v1143_v60, %v1142_v0 }
 0x293   : > { %v972_v39 = vsel %vm956_vm8, %v948_v26, %v964_v3 }
 0x294   : > { %v1037_v46 = vmul.f32 %v1276_v33, %v972_v39  ;;  %v990_v47 = vmul.f32 %v982_v51, %v972_v39  ;;  %v1084_v41 = vmul.f32 %v1285_v44, %v972_v39  ;;  %v1131_v48 = vmul.f32 %v1294_v11, %v972_v39 }
 0x295   : > { %v973_v51 = vlaneseq }
 0x296   : > { %v1051_v56 = vsel %vm731_vm0, %v1037_v46, 0.0  ;;  %v1004_v57 = vsel %vm731_vm0, %v990_v47, 0.0  ;;  %v1098_v50 = vsel %vm731_vm0, %v1084_v41, 0.0  ;;  %v1145_v1 = vsel %vm731_vm0, %v1131_v48, 0.0  ;;  %v1162_v47 = vld [vmem:[%s1912_s5] sm:$0x1] }
 0x297   : > { %v1052_v61 = vadd.f32 %v1051_v56, %v1050_v49  ;;  %v1005_v62 = vadd.f32 %v1004_v57, %v1003_v55  ;;  %v1099_v52 = vadd.f32 %v1098_v50, %v1097_v4  ;;  %v1146_v6 = vadd.f32 %v1145_v1, %v1144_v5 }
 0x298   : > { %v974_v12 = vand.u32 127, %v973_v51 }
 0x299   : > { %1053 = vadd.xlane.f32.xlu0 %v1052_v61  ;;  %1006 = vadd.xlane.f32.xlu1 %v1005_v62 }
 0x29a   : > { %vm1015_vm9 = vcmp.eq.s32.totalorder %v974_v12, 0  ;;  %vm1062_vm10 = vcmp.eq.s32.totalorder %v974_v12, 1  ;;  %vm1109_vm11 = vcmp.eq.s32.totalorder %v974_v12, 2  ;;  %vm1156_vm12 = vcmp.eq.s32.totalorder %v974_v12, 3 }
 0x29b   : > { %v1268_v3 = vsel %vm1015_vm9, 1.0, %v1480_v43  ;;  %v1277_v35 = vsel %vm1062_vm10, 1.0, %v1480_v43  ;;  %v1286_v36 = vsel %vm1109_vm11, 1.0, %v1480_v43  ;;  %v1295_v20 = vsel %vm1156_vm12, 1.0, %v1480_v43 }
 0x29d   : > { %1100 = vadd.xlane.f32.xlu0 %v1099_v52  ;;  %1147 = vadd.xlane.f32.xlu1 %v1146_v6 }
 0x322   : > { %v1054_v7 = vpop.xlane.xlu0 %1053  ;;  %v1007_v8 = vpop.xlane.xlu1 %1006 }
 0x323   : > { %v1055_v9 = vrot.slane %v1054_v7, 4  ;;  %v1008_v13 = vrot.slane %v1007_v8, 4 }
 0x325   : > { %v1056_v30 = vadd.f32 %v1055_v9, %v1054_v7  ;;  %v1009_v14 = vadd.f32 %v1008_v13, %v1007_v8 }
 0x326   : > { %v1101_v58 = vpop.xlane.xlu0 %1100  ;;  %v1148_v15 = vpop.xlane.xlu1 %1147 }
 0x327   : > { %v1057_v17 = vrot.slane %v1056_v30, 2  ;;  %v1010_v19 = vrot.slane %v1009_v14, 2  ;;  %v1102_v45 = vrot.slane %v1101_v58, 4  ;;  %v1149_v10 = vrot.slane %v1148_v15, 4 }
 0x329   : > { %v1103_v2 = vadd.f32 %v1102_v45, %v1101_v58  ;;  %v1150_v54 = vadd.f32 %v1149_v10, %v1148_v15  ;;  %v1011_v21 = vadd.f32 %v1010_v19, %v1009_v14  ;;  %v1058_v22 = vadd.f32 %v1057_v17, %v1056_v30 }
 0x32b   : > { %v1104_v23 = vrot.slane %v1103_v2, 2  ;;  %v1151_v18 = vrot.slane %v1150_v54, 2  ;;  %v1012_v25 = vrot.slane %v1011_v21, 1  ;;  %v1059_v27 = vrot.slane %v1058_v22, 1 }
 0x32d   : > { %v1105_v26 = vadd.f32 %v1104_v23, %v1103_v2  ;;  %v1152_v28 = vadd.f32 %v1151_v18, %v1150_v54  ;;  %v1013_v29 = vadd.f32 %v1012_v25, %v1011_v21  ;;  %v1060_v31 = vadd.f32 %v1059_v27, %v1058_v22 }
 0x32f   : > { %1379 = vpush %v1013_v29  ;;  %v1106_v53 = vrot.slane %v1105_v26, 1  ;;  %v1153_v32 = vrot.slane %v1152_v28, 1 }
 0x330   : > { %1381 = vpush %v1060_v31 }
 0x331   : > { %v1107_v33 = vadd.f32 %v1106_v53, %v1105_v26  ;;  %v1154_v34 = vadd.f32 %v1153_v32, %v1152_v28 }
 0x333   : > { %1383 = vpush %v1107_v33 }
 0x334   : > { %1385 = vpush %v1154_v34 }
 0x360   : > { %s1380_s23 = spop %1379 }
 0x361   : > { %v1018_v44 = vstv %s1380_s23  ;;  %s1382_s24 = spop %1381 }
 0x362   : > { %v1019_v11 = vmul.f32 %v1268_v3, %v1018_v44  ;;  %v1065_v38 = vstv %s1382_s24 }
 0x363   : > { %v1066_v16 = vmul.f32 %v1277_v35, %v1065_v38 }
 0x364   : > { %s1384_s25 = spop %1383 }
 0x365   : > { %v1112_v37 = vstv %s1384_s25  ;;  %s1386_s26 = spop %1385  ;;  %v1067_v39 = vadd.f32 %v1066_v16, %v1019_v11 }
 0x366   : > { %v1113_v40 = vmul.f32 %v1286_v36, %v1112_v37  ;;  %v1159_v42 = vstv %s1386_s26 }
 0x367   : > { %v1160_v46 = vmul.f32 %v1295_v20, %v1159_v42 }
 0x368   : > { %v1114_v24 = vadd.f32 %v1113_v40, %v1067_v39 }
 0x36a   : > { %v1161_v41 = vadd.f32 %v1160_v46, %v1114_v24 }
 0x36c   : > { %v1163_v48 = vadd.f32 %v1162_v47, %v1161_v41 }
 0x36e   : > { %1165 = vst.msk [vmem:[%s247_s7] sm:$0x1] %vm1164_vm13, %v1163_v48 }
 0x36f PF: > { %s16_s21 = sadd.s32 1, %s1477_s21  }
 0x370   : > { %p13_p4 = scmp.ge.s32.totalorder %s16_s21, 4  }
 0x372   :  { %15 = sbr.rel (!%p13_p4) target bundleno = 1 (0x1), region = 77 }

</bundles_post_ra>
